<compile_context>
chip_gen: v7x
topology: tpu7x:2x2x1
jax: 0.10.0
libtpu: 0.0.40
codegen_flags: <defaults>
</compile_context>

<pallas_src>
import math
import functools

import jax
import jax.numpy as jnp
from jax.experimental import pallas as pl
from jax.experimental.pallas import tpu as pltpu

# Comfortable everywhere: v5e/v6e have 128 MiB physical VMEM, v7x has 64 MiB.
_VMEM_LIMIT = 48 * 1024 * 1024


# ---------------------- Kernel 1: fused QKV projection + RoPE ----------------

def _qkv_rope_kernel(x_ref, w_ref, cos_ref, sina_ref, sinb_ref,
                     q_ref, k_ref, v_ref, acc_ref,
                     *, n_heads, n_kv_heads, head_dim):
    ki = pl.program_id(2)

    @pl.when(ki == 0)
    def _():
        acc_ref[...] = jnp.zeros_like(acc_ref)

    # (tq, tk) @ (tk, (n_heads + 2*n_kv)*D) -- bf16 in, f32 accumulate (MXU)
    acc_ref[...] += jnp.dot(x_ref[0], w_ref[...],
                            preferred_element_type=jnp.float32)

    @pl.when(ki == pl.num_programs(2) - 1)
    def _():
        D = head_dim
        half = D // 2
        w_qk = (n_heads + n_kv_heads) * D           # width of the q|k slab
        nq = n_heads * D
        acc = acc_ref[...]
        qk = acc[:, :w_qk]
        # Whole-slab rotate-half RoPE: two XLU rolls over the full q|k slab.
        # sina_w is nonzero only on the lower half of each head (value -sin),
        # sinb_w only on the upper half (value +sin), so the wrong-head values
        # the full-slab rolls drag across head boundaries are multiplied by 0.
        roped = (qk * cos_ref[...]
                 + pltpu.roll(qk, w_qk - half, 1) * sina_ref[...]
                 + pltpu.roll(qk, half, 1) * sinb_ref[...])
        q_ref[0] = roped[:, :nq].astype(q_ref.dtype)
        k_ref[0] = roped[:, nq:].astype(k_ref.dtype)
        v_ref[0] = acc[:, w_qk:].astype(v_ref.dtype)


def llama_qkv_rope(x, w_qkv, cos_w, sina_w, sinb_w, *, n_heads, n_kv_heads,
                   head_dim, tq=256, tk=512):
    B, S, H = x.shape
    n_qkv = n_heads + 2 * n_kv_heads
    tq = min(tq, S)
    tk = min(tk, H)
    assert S % tq == 0 and H % tk == 0
    assert w_qkv.shape == (H, n_qkv * head_dim)
    nq = n_heads * head_dim
    nkv = n_kv_heads * head_dim
    w_qk = (n_heads + n_kv_heads) * head_dim
    assert cos_w.shape == (S, w_qk)

    kernel = functools.partial(_qkv_rope_kernel, n_heads=n_heads,
                               n_kv_heads=n_kv_heads, head_dim=head_dim)

    cost = pl.CostEstimate(
        flops=int(2 * B * S * H * n_qkv * head_dim),
        transcendentals=0,
        bytes_accessed=int(B * S * H * 2
                           + B * (S // tq) * H * n_qkv * head_dim * 2
                           + 3 * S * w_qk * 4
                           + B * S * n_qkv * head_dim * 2))

    return pl.pallas_call(
        kernel,
        out_shape=(jax.ShapeDtypeStruct((B, S, nq), jnp.bfloat16),
                   jax.ShapeDtypeStruct((B, S, nkv), jnp.bfloat16),
                   jax.ShapeDtypeStruct((B, S, nkv), jnp.bfloat16)),
        grid_spec=pltpu.PrefetchScalarGridSpec(
            num_scalar_prefetch=0,
            grid=(B, S // tq, H // tk),
            in_specs=[
                pl.BlockSpec((1, tq, tk), lambda b, qi, ki: (b, qi, ki)),   # x
                pl.BlockSpec((tk, n_qkv * head_dim),
                             lambda b, qi, ki: (ki, 0)),                    # fused W
                pl.BlockSpec((tq, w_qk), lambda b, qi, ki: (qi, 0)),        # cos
                pl.BlockSpec((tq, w_qk), lambda b, qi, ki: (qi, 0)),        # -sin (lo half)
                pl.BlockSpec((tq, w_qk), lambda b, qi, ki: (qi, 0)),        # +sin (hi half)
            ],
            out_specs=[
                pl.BlockSpec((1, tq, nq), lambda b, qi, ki: (b, qi, 0)),    # q
                pl.BlockSpec((1, tq, nkv), lambda b, qi, ki: (b, qi, 0)),   # k
                pl.BlockSpec((1, tq, nkv), lambda b, qi, ki: (b, qi, 0)),   # v
            ],
            scratch_shapes=[pltpu.VMEM((tq, n_qkv * head_dim), jnp.float32)],
        ),
        compiler_params=pltpu.CompilerParams(
            dimension_semantics=("parallel", "parallel", "arbitrary"),
            vmem_limit_bytes=_VMEM_LIMIT),
        cost_estimate=cost,
    )(x, w_qkv, cos_w, sina_w, sinb_w)


# --------------- Kernel 2: flash attention (online softmax) + WO -------------

def _flash_wo_kernel(q_ref, k_ref, v_ref, wo_ref, o_ref,
                     m_scr, l_scr, acc_scr, *, tq, tkv, head_dim, n_rep):
    qi = pl.program_id(1)
    g = pl.program_id(2)          # kv-head group
    kv = pl.program_id(3)
    last_g = pl.num_programs(2) - 1
    last_kv = pl.num_programs(3) - 1
    del last_g  # output is written incrementally; nothing special on last g
    scale = 1.0 / math.sqrt(head_dim)
    D = head_dim

    # Output block is resident across (g, kv); init once per (b, qi).
    @pl.when(jnp.logical_and(g == 0, kv == 0))
    def _():
        o_ref[...] = jnp.zeros_like(o_ref)

    @pl.when(kv == 0)
    def _():
        m_scr[...] = jnp.full_like(m_scr, -jnp.inf)
        l_scr[...] = jnp.zeros_like(l_scr)
        acc_scr[...] = jnp.zeros_like(acc_scr)

    q_start = qi * tq
    kv_start = kv * tkv

    # Skip KV tiles that lie entirely above the causal diagonal (the K/V DMA
    # for these steps is already elided by the clamped index_map).
    @pl.when(kv_start < q_start + tq)
    def _():
        k = k_ref[0]                                   # (tkv, D) bf16
        v = v_ref[0]                                   # (tkv, D) bf16
        row = q_start + jax.lax.broadcasted_iota(jnp.int32, (tq, tkv), 0)
        col = kv_start + jax.lax.broadcasted_iota(jnp.int32, (tq, tkv), 1)
        causal = row >= col

        # All n_rep query heads of this kv-group share the same K/V tile.
        for r in range(n_rep):
            q = q_ref[0, :, r * D:(r + 1) * D]         # (tq, D) bf16
            s = jax.lax.dot_general(q, k, (((1,), (1,)), ((), ())),
                                    preferred_element_type=jnp.float32) * scale
            s = jnp.where(causal, s, -jnp.inf)
            m_prev = m_scr[r]
            m_new = jnp.maximum(m_prev, jnp.max(s, axis=-1, keepdims=True))
            alpha = jnp.exp(m_prev - m_new)
            p = jnp.exp(s - m_new)
            l_scr[r] = alpha * l_scr[r] + jnp.sum(p, axis=-1, keepdims=True)
            acc_scr[r] = alpha * acc_scr[r] + jnp.dot(
                p.astype(v.dtype), v, preferred_element_type=jnp.float32)
            m_scr[r] = m_new

    # Per-group finalize: fold the normalized head outputs directly into the
    # resident f32 output block via the WO row-block for this group.
    @pl.when(kv == last_kv)
    def _():
        outs = []
        for r in range(n_rep):
            inv_l = pl.reciprocal(l_scr[r], approx=True)
            outs.append((acc_scr[r] * inv_l).astype(wo_ref.dtype))
        o_heads = outs[0] if n_rep == 1 else jnp.concatenate(outs, axis=-1)
        o_ref[0] += jnp.dot(o_heads, wo_ref[...],
                            preferred_element_type=jnp.float32)


def llama_flash_wo(q, k, v, wo, *, n_heads, n_kv_heads, head_dim, hidden,
                   tq=256, tkv=256):
    B, S, _ = q.shape
    tq = min(tq, S)
    tkv = min(tkv, S)
    assert S % tq == 0 and S % tkv == 0
    assert n_heads % n_kv_heads == 0
    n_rep = n_heads // n_kv_heads
    G = n_kv_heads
    D = head_dim

    kernel = functools.partial(_flash_wo_kernel, tq=tq, tkv=tkv,
                               head_dim=head_dim, n_rep=n_rep)

    # Clamp the kv block index so that causally dead tiles repeat the previous
    # block index and Pallas elides the K/V copy entirely.
    def kv_index(b, qi, g, kv):
        last_needed = ((qi + 1) * tq - 1) // tkv
        return (b, jnp.minimum(kv, last_needed), g)

    cost = pl.CostEstimate(
        flops=int(2 * B * n_heads * S * S * D          # QK^T + PV, causal ~ /2
                  + 2 * B * S * n_heads * D * hidden),
        transcendentals=int(B * n_heads * S * S // 2),
        bytes_accessed=int(B * S * n_heads * D * 2
                           + B * (S // tq) * G * S * D * 2 * 2 // 2
                           + B * (S // tq) * G * n_rep * D * hidden * 2
                           + B * S * hidden * 4))

    return pl.pallas_call(
        kernel,
        out_shape=jax.ShapeDtypeStruct((B, S, hidden), jnp.float32),
        grid_spec=pltpu.PrefetchScalarGridSpec(
            num_scalar_prefetch=0,
            grid=(B, S // tq, G, S // tkv),
            in_specs=[
                pl.BlockSpec((1, tq, n_rep * D),
                             lambda b, qi, g, kv: (b, qi, g)),              # q group
                pl.BlockSpec((1, tkv, D), kv_index),                        # k (GQA, clamped)
                pl.BlockSpec((1, tkv, D), kv_index),                        # v (GQA, clamped)
                pl.BlockSpec((n_rep * D, hidden),
                             lambda b, qi, g, kv: (g, 0)),                  # wo row-block
            ],
            out_specs=pl.BlockSpec((1, tq, hidden),
                                   lambda b, qi, g, kv: (b, qi, 0)),
            scratch_shapes=[
                pltpu.VMEM((n_rep, tq, 1), jnp.float32),   # running max (per rep)
                pltpu.VMEM((n_rep, tq, 1), jnp.float32),   # running sum (per rep)
                pltpu.VMEM((n_rep, tq, D), jnp.float32),   # PV accum (per rep)
            ],
        ),
        compiler_params=pltpu.CompilerParams(
            dimension_semantics=("parallel", "parallel",
                                 "arbitrary", "arbitrary"),
            vmem_limit_bytes=_VMEM_LIMIT),
        cost_estimate=cost,
    )(q, k, v, wo)


def llama_attention_pallas(x, w_qkv, wo, cos_w, sina_w, sinb_w, *, n_heads,
                           n_kv_heads, head_dim, tq1=256, tk1=512,
                           tq2=256, tkv2=256):
    q, k, v = llama_qkv_rope(x, w_qkv, cos_w, sina_w, sinb_w,
                             n_heads=n_heads, n_kv_heads=n_kv_heads,
                             head_dim=head_dim, tq=tq1, tk=tk1)
    return llama_flash_wo(q, k, v, wo, n_heads=n_heads,
                          n_kv_heads=n_kv_heads, head_dim=head_dim,
                          hidden=wo.shape[1], tq=tq2, tkv=tkv2)


# ------------------------- pure-JAX Meta-style reference ---------------------

def _precompute_freqs(head_dim, seq, theta):
    freqs = 1.0 / (theta ** (jnp.arange(0, head_dim, 2, dtype=jnp.float32) / head_dim))
    t = jnp.arange(seq, dtype=jnp.float32)
    ang = jnp.outer(t, freqs)                       # (seq, D//2)
    return jnp.cos(ang), jnp.sin(ang)


def _apply_rope_interleaved(x, cosf, sinf):
    xr, xi = x[..., 0::2], x[..., 1::2]
    c = cosf[None, :, None, :]
    s = sinf[None, :, None, :]
    out_r = xr * c - xi * s
    out_i = xr * s + xi * c
    return jnp.stack([out_r, out_i], axis=-1).reshape(x.shape)


def reference_attention(x, wq, wk, wv, wo, cosf, sinf, mask,
                        *, n_heads, n_kv_heads, head_dim):
    B, S, _ = x.shape
    n_rep = n_heads // n_kv_heads
    q = (x @ wq).reshape(B, S, n_heads, head_dim)
    k = (x @ wk).reshape(B, S, n_kv_heads, head_dim)
    v = (x @ wv).reshape(B, S, n_kv_heads, head_dim)
    q = _apply_rope_interleaved(q, cosf, sinf)
    k = _apply_rope_interleaved(k, cosf, sinf)
    k = jnp.repeat(k, n_rep, axis=2)
    v = jnp.repeat(v, n_rep, axis=2)
    q = q.transpose(0, 2, 1, 3)
    k = k.transpose(0, 2, 1, 3)
    v = v.transpose(0, 2, 1, 3)
    scores = jnp.einsum("bhqd,bhkd->bhqk", q, k) / math.sqrt(head_dim)
    scores = scores + mask[None, None]
    p = jax.nn.softmax(scores, axis=-1)
    o = jnp.einsum("bhqk,bhkd->bhqd", p, v)
    o = o.transpose(0, 2, 1, 3).reshape(B, S, n_heads * head_dim)
    return o @ wo


# ------------------------------------ main -----------------------------------

if __name__ == "__main__":
    # Small but TPU-tile-aligned configuration (real Llama head_dim=128).
    batch, seq = 2, 128
    n_heads, n_kv_heads = 2, 1            # GQA, n_rep = 2
    head_dim = 128
    hidden = n_heads * head_dim           # 256
    rope_theta = 10000.0
    start_pos = 0                         # prefill

    key = jax.random.PRNGKey(0)
    kx, kq, kk, kv_, ko = jax.random.split(key, 5)

    x = jax.random.normal(kx, (batch, seq, hidden), dtype=jnp.float32)
    wq = 0.02 * jax.random.normal(kq, (hidden, n_heads * head_dim), dtype=jnp.float32)
    wk = 0.02 * jax.random.normal(kk, (hidden, n_kv_heads * head_dim), dtype=jnp.float32)
    wv = 0.02 * jax.random.normal(kv_, (hidden, n_kv_heads * head_dim), dtype=jnp.float32)
    wo = 0.02 * jax.random.normal(ko, (n_heads * head_dim, hidden), dtype=jnp.float32)

    cosf, sinf = _precompute_freqs(head_dim, start_pos + seq, rope_theta)
    cosf, sinf = cosf[start_pos:start_pos + seq], sinf[start_pos:start_pos + seq]

    # glue: interleaved -> half-split column permutation for q/k weights
    perm = jnp.concatenate([jnp.arange(0, head_dim, 2),
                            jnp.arange(1, head_dim, 2)])

    def permute_heads(w, nh):
        w3 = w.reshape(hidden, nh, head_dim)
        return w3[:, :, perm].reshape(hidden, nh * head_dim)

    # glue: fused [Wq | Wk | Wv] (GQA kept un-expanded), bf16 for HBM/MXU
    w_qkv = jnp.concatenate([permute_heads(wq, n_heads),
                             permute_heads(wk, n_kv_heads),
                             wv], axis=1).astype(jnp.bfloat16)
    wo_bf = wo.astype(jnp.bfloat16)
    x_bf = x.astype(jnp.bfloat16)

    # glue: RoPE tables, sign/zero masks folded in, tiled to the q|k slab width
    zeros = jnp.zeros_like(sinf)
    cos_head = jnp.concatenate([cosf, cosf], axis=-1)        # (S, D)
    sina_head = jnp.concatenate([-sinf, zeros], axis=-1)     # -sin on lower half
    sinb_head = jnp.concatenate([zeros, sinf], axis=-1)      # +sin on upper half
    n_qk = n_heads + n_kv_heads
    cos_w = jnp.tile(cos_head, (1, n_qk))                    # (S, (nH+nKV)*D) f32
    sina_w = jnp.tile(sina_head, (1, n_qk))
    sinb_w = jnp.tile(sinb_head, (1, n_qk))

    out = llama_attention_pallas(x_bf, w_qkv, wo_bf, cos_w, sina_w, sinb_w,
                                 n_heads=n_heads, n_kv_heads=n_kv_heads,
                                 head_dim=head_dim)
    out = jax.block_until_ready(out)

    mask = jnp.triu(jnp.full((seq, seq), float("-inf"), dtype=jnp.float32), k=1)
    ref = reference_attention(x, wq, wk, wv, wo, cosf, sinf, mask,
                              n_heads=n_heads, n_kv_heads=n_kv_heads,
                              head_dim=head_dim)
    assert out.shape == (batch, seq, hidden)
    max_err = float(jnp.max(jnp.abs(out - ref)))
    assert jnp.allclose(out, ref, atol=2e-2, rtol=2e-2), \
        f"mismatch vs reference (max |err| = {max_err})"
    print("KERNEL_OK")
</pallas_src>

<mosaic_0001>
module attributes {stable_mosaic.version = 11 : i64} {
  func.func @_qkv_rope_kernel(%arg0: i32, %arg1: i32, %arg2: i32, %arg3: memref<1x128x256xbf16, #tpu.memory_space<vmem>>, %arg4: memref<256x512xbf16, #tpu.memory_space<vmem>>, %arg5: memref<128x384xf32, #tpu.memory_space<vmem>>, %arg6: memref<128x384xf32, #tpu.memory_space<vmem>>, %arg7: memref<128x384xf32, #tpu.memory_space<vmem>>, %arg8: memref<1x128x256xbf16, #tpu.memory_space<vmem>>, %arg9: memref<1x128x128xbf16, #tpu.memory_space<vmem>>, %arg10: memref<1x128x128xbf16, #tpu.memory_space<vmem>>, %arg11: memref<128x512xf32, #tpu.memory_space<vmem>>) attributes {dimension_semantics = [#tpu.dimension_semantics<parallel>, #tpu.dimension_semantics<parallel>, #tpu.dimension_semantics<arbitrary>], iteration_bounds = array<i64: 2, 1, 1>, scalar_prefetch = 0 : i64, scratch_operands = 1 : i64, tpu.core_type = #tpu.core_type<tc>, window_params = [{transform_indices = @transform_0, window_bounds = array<i64: 1, 128, 256>}, {transform_indices = @transform_1, window_bounds = array<i64: 256, 512>}, {transform_indices = @transform_2, window_bounds = array<i64: 128, 384>}, {transform_indices = @transform_3, window_bounds = array<i64: 128, 384>}, {transform_indices = @transform_4, window_bounds = array<i64: 128, 384>}, {transform_indices = @transform_5, window_bounds = array<i64: 1, 128, 256>}, {transform_indices = @transform_6, window_bounds = array<i64: 1, 128, 128>}, {transform_indices = @transform_7, window_bounds = array<i64: 1, 128, 128>}]} {
    %c0_i32 = arith.constant 0 : i32
    %0 = arith.cmpi eq, %arg2, %c0_i32 : i32
    %1 = arith.extui %0 : i1 to i32
    %c0_i32_0 = arith.constant 0 : i32
    %2 = arith.cmpi ne, %1, %c0_i32_0 : i32
    scf.if %2 {
      %cst_11 = arith.constant 0.000000e+00 : f32
      %13 = vector.broadcast %cst_11 : f32 to vector<128x512xf32>
      %c0_12 = arith.constant 0 : index
      %c0_13 = arith.constant 0 : index
      %14 = vector.load %arg11[%c0_12, %c0_13] : memref<128x512xf32, #tpu.memory_space<vmem>>, vector<128x512xf32>
      tpu.vector_store %arg11[%c0_12, %c0_13], %13 {strides = array<i32>} : memref<128x512xf32, #tpu.memory_space<vmem>>, vector<128x512xf32>,
    } else {
    }
    %c0 = arith.constant 0 : index
    %c0_1 = arith.constant 0 : index
    %3 = vector.load %arg11[%c0, %c0_1] : memref<128x512xf32, #tpu.memory_space<vmem>>, vector<128x512xf32>
    %c0_2 = arith.constant 0 : index
    %c0_3 = arith.constant 0 : index
    %c0_4 = arith.constant 0 : index
    %4 = vector.load %arg3[%c0_2, %c0_3, %c0_4] : memref<1x128x256xbf16, #tpu.memory_space<vmem>>, vector<1x128x256xbf16>
    %5 = vector.shape_cast %4 : vector<1x128x256xbf16> to vector<128x256xbf16>
    %c0_5 = arith.constant 0 : index
    %c0_6 = arith.constant 0 : index
    %6 = vector.load %arg4[%c0_5, %c0_6] : memref<256x512xbf16, #tpu.memory_space<vmem>>, vector<256x512xbf16>
    %cst = arith.constant dense<0.000000e+00> : vector<128x512xf32>
    %7 = tpu.matmul %5, %6, %cst {dimension_numbers = #tpu.dot_dimension_numbers<[1], [0], [0], [1], [0, 0, 1, 1], [], []>} : vector<128x256xbf16>, vector<256x512xbf16>, vector<128x512xf32> -> vector<128x512xf32>
    %8 = arith.addf %3, %7 : vector<128x512xf32>
    %c0_7 = arith.constant 0 : index
    %c0_8 = arith.constant 0 : index
    %9 = vector.load %arg11[%c0_7, %c0_8] : memref<128x512xf32, #tpu.memory_space<vmem>>, vector<128x512xf32>
    tpu.vector_store %arg11[%c0_7, %c0_8], %8 {strides = array<i32>} : memref<128x512xf32, #tpu.memory_space<vmem>>, vector<128x512xf32>,
    %c0_i32_9 = arith.constant 0 : i32
    %10 = arith.cmpi eq, %arg2, %c0_i32_9 : i32
    %11 = arith.extui %10 : i1 to i32
    %c0_i32_10 = arith.constant 0 : i32
    %12 = arith.cmpi ne, %11, %c0_i32_10 : i32
    scf.if %12 {
      %c0_11 = arith.constant 0 : index
      %c0_12 = arith.constant 0 : index
      %13 = vector.load %arg11[%c0_11, %c0_12] : memref<128x512xf32, #tpu.memory_space<vmem>>, vector<128x512xf32>
      %14 = vector.extract_strided_slice %13 {offsets = [0, 0], sizes = [128, 384], strides = [1, 1]} : vector<128x512xf32> to vector<128x384xf32>
      %c0_13 = arith.constant 0 : index
      %c0_14 = arith.constant 0 : index
      %15 = vector.load %arg5[%c0_13, %c0_14] : memref<128x384xf32, #tpu.memory_space<vmem>>, vector<128x384xf32>
      %16 = arith.mulf %14, %15 : vector<128x384xf32>
      %c320_i32 = arith.constant 320 : i32
      %17 = tpu.dynamic_rotate %14 by %c320_i32 dim 1 : vector<128x384xf32>, i32 -> vector<128x384xf32>
      %c0_15 = arith.constant 0 : index
      %c0_16 = arith.constant 0 : index
      %18 = vector.load %arg6[%c0_15, %c0_16] : memref<128x384xf32, #tpu.memory_space<vmem>>, vector<128x384xf32>
      %19 = arith.mulf %17, %18 : vector<128x384xf32>
      %20 = arith.addf %16, %19 : vector<128x384xf32>
      %c64_i32 = arith.constant 64 : i32
      %21 = tpu.dynamic_rotate %14 by %c64_i32 dim 1 : vector<128x384xf32>, i32 -> vector<128x384xf32>
      %c0_17 = arith.constant 0 : index
      %c0_18 = arith.constant 0 : index
      %22 = vector.load %arg7[%c0_17, %c0_18] : memref<128x384xf32, #tpu.memory_space<vmem>>, vector<128x384xf32>
      %23 = arith.mulf %21, %22 : vector<128x384xf32>
      %24 = arith.addf %20, %23 : vector<128x384xf32>
      %25 = vector.extract_strided_slice %24 {offsets = [0, 0], sizes = [128, 256], strides = [1, 1]} : vector<128x384xf32> to vector<128x256xf32>
      %26 = arith.truncf %25 : vector<128x256xf32> to vector<128x256xbf16>
      %c0_19 = arith.constant 0 : index
      %c0_20 = arith.constant 0 : index
      %c0_21 = arith.constant 0 : index
      %27 = vector.load %arg8[%c0_19, %c0_20, %c0_21] : memref<1x128x256xbf16, #tpu.memory_space<vmem>>, vector<1x128x256xbf16>
      %28 = vector.shape_cast %27 : vector<1x128x256xbf16> to vector<128x256xbf16>
      %29 = vector.shape_cast %26 : vector<128x256xbf16> to vector<1x128x256xbf16>
      tpu.vector_store %arg8[%c0_19, %c0_20, %c0_21], %29 {strides = array<i32>} : memref<1x128x256xbf16, #tpu.memory_space<vmem>>, vector<1x128x256xbf16>,
      %30 = vector.extract_strided_slice %24 {offsets = [0, 256], sizes = [128, 128], strides = [1, 1]} : vector<128x384xf32> to vector<128x128xf32>
      %31 = arith.truncf %30 : vector<128x128xf32> to vector<128x128xbf16>
      %c0_22 = arith.constant 0 : index
      %c0_23 = arith.constant 0 : index
      %c0_24 = arith.constant 0 : index
      %32 = vector.load %arg9[%c0_22, %c0_23, %c0_24] : memref<1x128x128xbf16, #tpu.memory_space<vmem>>, vector<1x128x128xbf16>
      %33 = vector.shape_cast %32 : vector<1x128x128xbf16> to vector<128x128xbf16>
      %34 = vector.shape_cast %31 : vector<128x128xbf16> to vector<1x128x128xbf16>
      tpu.vector_store %arg9[%c0_22, %c0_23, %c0_24], %34 {strides = array<i32>} : memref<1x128x128xbf16, #tpu.memory_space<vmem>>, vector<1x128x128xbf16>,
      %35 = vector.extract_strided_slice %13 {offsets = [0, 384], sizes = [128, 128], strides = [1, 1]} : vector<128x512xf32> to vector<128x128xf32>
      %36 = arith.truncf %35 : vector<128x128xf32> to vector<128x128xbf16>
      %c0_25 = arith.constant 0 : index
      %c0_26 = arith.constant 0 : index
      %c0_27 = arith.constant 0 : index
      %37 = vector.load %arg10[%c0_25, %c0_26, %c0_27] : memref<1x128x128xbf16, #tpu.memory_space<vmem>>, vector<1x128x128xbf16>
      %38 = vector.shape_cast %37 : vector<1x128x128xbf16> to vector<128x128xbf16>
      %39 = vector.shape_cast %36 : vector<128x128xbf16> to vector<1x128x128xbf16>
      tpu.vector_store %arg10[%c0_25, %c0_26, %c0_27], %39 {strides = array<i32>} : memref<1x128x128xbf16, #tpu.memory_space<vmem>>, vector<1x128x128xbf16>,
    } else {
    }
    return
  }
  func.func @transform_0(%arg0: i32, %arg1: i32, %arg2: i32) -> (i32, i32, i32) {
    %c0_i32 = arith.constant 0 : i32
    return %arg0, %arg1, %arg2 : i32, i32, i32
  }
  func.func @transform_1(%arg0: i32, %arg1: i32, %arg2: i32) -> (i32, i32) {
    %c0_i32 = arith.constant 0 : i32
    %c0_i32_0 = arith.constant 0 : i32
    return %arg2, %c0_i32 : i32, i32
  }
  func.func @transform_2(%arg0: i32, %arg1: i32, %arg2: i32) -> (i32, i32) {
    %c0_i32 = arith.constant 0 : i32
    %c0_i32_0 = arith.constant 0 : i32
    return %arg1, %c0_i32 : i32, i32
  }
  func.func @transform_3(%arg0: i32, %arg1: i32, %arg2: i32) -> (i32, i32) {
    %c0_i32 = arith.constant 0 : i32
    %c0_i32_0 = arith.constant 0 : i32
    return %arg1, %c0_i32 : i32, i32
  }
  func.func @transform_4(%arg0: i32, %arg1: i32, %arg2: i32) -> (i32, i32) {
    %c0_i32 = arith.constant 0 : i32
    %c0_i32_0 = arith.constant 0 : i32
    return %arg1, %c0_i32 : i32, i32
  }
  func.func @transform_5(%arg0: i32, %arg1: i32, %arg2: i32) -> (i32, i32, i32) {
    %c0_i32 = arith.constant 0 : i32
    %c0_i32_0 = arith.constant 0 : i32
    return %arg0, %arg1, %c0_i32 : i32, i32, i32
  }
  func.func @transform_6(%arg0: i32, %arg1: i32, %arg2: i32) -> (i32, i32, i32) {
    %c0_i32 = arith.constant 0 : i32
    %c0_i32_0 = arith.constant 0 : i32
    return %arg0, %arg1, %c0_i32 : i32, i32, i32
  }
  func.func @transform_7(%arg0: i32, %arg1: i32, %arg2: i32) -> (i32, i32, i32) {
    %c0_i32 = arith.constant 0 : i32
    %c0_i32_0 = arith.constant 0 : i32
    return %arg0, %arg1, %c0_i32 : i32, i32, i32
  }
}

</mosaic_0001>

<bundles_post_ra>
// kernel: tpu_custom_call.1
= control target key start
LH: loop header
LB: loop body
LE: loop exit
PB: predicated region body
PF: predicated region fallthrough
CT: control target
= control target key end

     0   :  { %s4225_s0 = inlined_call_operand.hbm [shape: bf16[2,128,256], index: 0, kind: input, shape index: {}]   ;;  %s4226_s1 = inlined_call_operand.hbm [shape: bf16[256,512], index: 1, kind: input, shape index: {}]   ;;  %s4227_s2 = inlined_call_operand.hbm [shape: f32[128,384], index: 2, kind: input, shape index: {}]   ;;  %s4228_s3 = inlined_call_operand.hbm [shape: f32[128,384], index: 3, kind: input, shape index: {}]   ;;  %s4229_s4 = inlined_call_operand.hbm [shape: f32[128,384], index: 4, kind: input, shape index: {}]   ;;  %s4230_s5 = inlined_call_operand.hbm [shape: bf16[2,128,256], index: 5, kind: output, shape index: {0}]   ;;  %s4231_s6 = inlined_call_operand.hbm [shape: bf16[2,128,128], index: 6, kind: output, shape index: {1}]   ;;  %s4232_s7 = inlined_call_operand.hbm [shape: bf16[2,128,128], index: 7, kind: output, shape index: {2}]  }
   0x1   :  { %4262 = sst [smem:[#allocation42_spill]] %s4225_s0 }
   0x2   :  { %4263 = sst [smem:[#allocation43_spill]] %s4226_s1 }
   0x3   :  { %4264 = sst [smem:[#allocation44_spill]] %s4230_s5 }
   0x4   :  { %4265 = sst [smem:[#allocation45_spill]] %s4232_s7 }
   0x5   :  { %13 = vsyncpa [#allocation4], 0 }
   0x6   :  { %15 = vsyncpa [#allocation4 + $0x1], 0 }
   0x7   :  { %16 = vsyncpa [#allocation7], 0 }
   0x8   :  { %17 = vsyncpa [#allocation10], 0 }
   0x9   :  { %18 = vsyncpa [#allocation5], 0 }
   0xa   :  { %20 = vsyncpa [#allocation5 + $0x1], 0 }
   0xb   :  { %21 = vsyncpa [#allocation14], 0 }
   0xc   :  { %23 = vsyncpa [#allocation14 + $0x1], 0  ;;  %s3456_s24 = smov 0   ;;  %s3458_s25 = smov 0  }
   0xd   :  { %s3460_s26 = smov 0   ;;  %s3462_s27 = smov 0  }
   0xe   :  { %s3464_s28 = smov 0   ;;  %s3466_s29 = smov 0  }
   0xf LB: > { %4266 = sst [smem:[#allocation21_spill]] %s3376_s24  ;;  %s3487_s30 = sadd.s32 4294967295, %s3396_s29   ;;  %s3396_s29 = sphi %s3466_s29, %s29_s29   ;;  %s3392_s28 = sphi %s3464_s28, %s4334_s28   ;;  %s3388_s27 = sphi %s3462_s27, %s4333_s27   ;;  %s3384_s26 = sphi %s3460_s26, %s4332_s26   ;;  %s3380_s25 = sphi %s3458_s25, %s4331_s25   ;;  %s3376_s24 = sphi %s3456_s24, %s4330_s24  }
  0x10   : > { %s4236_s8 = sadd.s32 4294967294, %s3396_s29   ;;  %p72_p0 = scmp.ne.s32.totalorder %s3380_s25, %s3376_s24 }
  0x11   : > { %p4233_p1 = scmp.eq.s32.totalorder %s3487_s30, 0  ;;  %p208_p3 = scmp.eq.s32.totalorder %s4236_s8, 1 }
  0x12   : > { %p2558_p5 = scmp.ge.s32.totalorder %s3396_s29, 1  ;;  %p271_p7 = scmp.lt.s32.totalorder %s3396_s29, 3 }
  0x13   : > { %p3498_p4 = por %p4233_p1, %p72_p0  ;;  %p3503_p6 = por %p208_p3, %p72_p0 }
  0x14   : > { %p3508_p8 = pnand %p2558_p5, %p271_p7  ;;  %s3398_s12 = smov [#allocation6]  }
  0x15   : > { %s4267_s9 = scalar_select %p3498_p4, 1, 0 }
  0x16   : > { %s4268_s10 = scalar_select %p3503_p6, 1, 0 }
  0x17   : > { %s4270_s11 = scalar_select %p3508_p8, 1, 0 }
  0x18   : > { %4269 = sst [smem:[#allocation22_spill]] %s4268_s10  ;;  %s287_s13 = sshll.u32 %s3398_s12, 4  ;;  %s288_s13 = int_to_ptr.vmem [resolvable:$true] %s287_s13 }
  0x19   : > { %p2885_p9 = pneg %p3508_p8  ;;  %s3399_s15 = smov [#allocation9]  }
  0x1a   : > { %s321_s16 = sshll.u32 %s3399_s15, 4  ;;  %s4272_s1 = sld [smem:[#allocation43_spill]]  ;;  %s322_s16 = int_to_ptr.vmem [resolvable:$true] %s321_s16 }
  0x1b   : > { %p3517_p11 = pnand %p2885_p9, %p4233_p1 }
  0x1d   : > { %p3529_p13 = pneg %p3517_p11 }
  0x20   : > { %s3104_s19 = scalar_lea.hbm %s4272_s1, 8192 }
  0x21   : > { %p3105_p12 = scmp.ne.s32.totalorder %s4272_s1, %s3104_s19  ;;  %p3111_p5 = scmp.lt.u32.totalorder %s3104_s19, %s4272_s1 }
  0x23   : > { %p3107_p0 = pnand %p3529_p13, %p3105_p12 }
  0x25   : > { %p3108_p3 = pneg %p3107_p0 }
  0x27   : > { %p3113_p7 = pnand %p3111_p5, %p3108_p3 }
  0x29   : > { %3116 = shalt.err (!%p3113_p7)
}
  0x2a   : > { %s3117_s15 = scalar_lea.vmem %s288_s13, 8192  ;;  %p3125_p2 = scmp.lt.s32.totalorder %s288_s13, %s288_s13 }
  0x2b   : > { %p3118_p9 = scmp.ne.s32.totalorder %s288_s13, %s3117_s15  ;;  %p3126_p6 = scmp.lt.s32.totalorder %s3117_s15, %s3117_s15 }
  0x2d   : > { %p3120_p10 = pnand %p3118_p9, %p3529_p13  ;;  %p3127_p4 = por %p3126_p6, %p3125_p2 }
  0x2f   : > { %p3121_p1 = pneg %p3120_p10 }
  0x31   : > { %p3128_p8 = pnand %p3127_p4, %p3121_p1 }
  0x33   : > { %3131 = shalt.err (!%p3128_p8)
}
  0x34   : > { %s3400_s17 = smov 256   ;;  %s3401_s18 = smov 16  }
  0x35   : > { %2888 = dma.hbm_to_vmem [thread:$0]  (!%p3517_p11), %s4272_s1, 8192, %s288_s13, [#allocation7], %s3400_s17, %s3400_s17, %s3401_s18  }
  0x36   : > { %s3402_s21 = smov [#allocation8]   ;;  %s3132_s10 = scalar_lea.hbm %s4228_s3, 6144 }
  0x37   : > { %s304_s23 = sshll.u32 %s3402_s21, 4  ;;  %p3133_p1 = scmp.ne.s32.totalorder %s4228_s3, %s3132_s10  ;;  %s305_s23 = int_to_ptr.vmem [resolvable:$true] %s304_s23 }
  0x38   : > { %p3139_p6 = scmp.lt.u32.totalorder %s3132_s10, %s4228_s3 }
  0x39   : > { %p3135_p2 = pnand %p3133_p1, %p3529_p13 }
  0x3b   : > { %p3136_p4 = pneg %p3135_p2 }
  0x3d   : > { %p3141_p8 = pnand %p3139_p6, %p3136_p4 }
  0x3f   : > { %3144 = shalt.err (!%p3141_p8)
}
  0x40   : > { %s3145_s13 = scalar_lea.vmem %s322_s16, 6144  ;;  %p3153_p3 = scmp.lt.s32.totalorder %s322_s16, %s322_s16 }
  0x41   : > { %p3146_p10 = scmp.ne.s32.totalorder %s322_s16, %s3145_s13  ;;  %p3154_p5 = scmp.lt.s32.totalorder %s3145_s13, %s3145_s13 }
  0x43   : > { %p3148_p12 = pnand %p3146_p10, %p3529_p13  ;;  %p3155_p7 = por %p3154_p5, %p3153_p3 }
  0x45   : > { %p3149_p0 = pneg %p3148_p12 }
  0x47   : > { %p3156_p9 = pnand %p3155_p7, %p3149_p0 }
  0x49   : > { %3159 = shalt.err (!%p3156_p9)
}
  0x4a   : > { %s3403_s24 = smov 384   ;;  %s3404_s8 = smov 24  }
  0x4b   : > { %2894 = dma.hbm_to_vmem [thread:$0]  (!%p3517_p11), %s4228_s3, 6144, %s322_s16, [#allocation10], %s3403_s24, %s3403_s24, %s3404_s8  }
  0x4c   : > { %s3160_s18 = scalar_lea.hbm %s4227_s2, 6144 }
  0x4d   : > { %p3161_p1 = scmp.ne.s32.totalorder %s4227_s2, %s3160_s18  ;;  %p3167_p6 = scmp.lt.u32.totalorder %s3160_s18, %s4227_s2 }
  0x4f   : > { %p3163_p2 = pnand %p3161_p1, %p3529_p13 }
  0x51   : > { %p3164_p4 = pneg %p3163_p2 }
  0x53   : > { %p3169_p8 = pnand %p3167_p6, %p3164_p4 }
  0x55   : > { %3172 = shalt.err (!%p3169_p8)
}
  0x56   : > { %s3173_s15 = scalar_lea.vmem %s305_s23, 6144  ;;  %p3181_p3 = scmp.lt.s32.totalorder %s305_s23, %s305_s23 }
  0x57   : > { %p3174_p10 = scmp.ne.s32.totalorder %s305_s23, %s3173_s15  ;;  %p3182_p5 = scmp.lt.s32.totalorder %s3173_s15, %s3173_s15 }
  0x59   : > { %p3176_p12 = pnand %p3174_p10, %p3529_p13  ;;  %p3183_p7 = por %p3182_p5, %p3181_p3 }
  0x5b   : > { %p3177_p0 = pneg %p3176_p12 }
  0x5d   : > { %p3184_p9 = pnand %p3183_p7, %p3177_p0 }
  0x5f   : > { %3187 = shalt.err (!%p3184_p9)
}
  0x60   : > { %2891 = dma.hbm_to_vmem [thread:$0]  (!%p3517_p11), %s4227_s2, 6144, %s305_s23, [#allocation7], %s3403_s24, %s3403_s24, %s3404_s8  }
  0x61   : > { %s3405_s5 = smov [#allocation11]   ;;  %s3188_s18 = scalar_lea.hbm %s4229_s4, 6144 }
  0x62   : > { %s338_s7 = sshll.u32 %s3405_s5, 4  ;;  %p3189_p1 = scmp.ne.s32.totalorder %s4229_s4, %s3188_s18  ;;  %s339_s7 = int_to_ptr.vmem [resolvable:$true] %s338_s7 }
  0x63   : > { %p3195_p6 = scmp.lt.u32.totalorder %s3188_s18, %s4229_s4 }
  0x64   : > { %p3191_p2 = pnand %p3189_p1, %p3529_p13 }
  0x66   : > { %p3192_p4 = pneg %p3191_p2 }
  0x68   : > { %p3197_p8 = pnand %p3195_p6, %p3192_p4 }
  0x6a   : > { %3200 = shalt.err (!%p3197_p8)
}
  0x6b   : > { %s3201_s23 = scalar_lea.vmem %s339_s7, 6144  ;;  %p3209_p3 = scmp.lt.s32.totalorder %s339_s7, %s339_s7 }
  0x6c   : > { %p3202_p10 = scmp.ne.s32.totalorder %s339_s7, %s3201_s23  ;;  %p3210_p5 = scmp.lt.s32.totalorder %s3201_s23, %s3201_s23 }
  0x6e   : > { %p3204_p12 = pnand %p3202_p10, %p3529_p13  ;;  %p3211_p7 = por %p3210_p5, %p3209_p3 }
  0x70   : > { %p3205_p0 = pneg %p3204_p12 }
  0x72   : > { %p3212_p9 = pnand %p3211_p7, %p3205_p0 }
  0x74   : > { %3215 = shalt.err (!%p3212_p9)
}
  0x75   : > { %2897 = dma.hbm_to_vmem [thread:$0]  (!%p3517_p11), %s4229_s4, 6144, %s339_s7, [#allocation10], %s3403_s24, %s3403_s24, %s3404_s8  }
  0x76   : > { %s48_s22 = sadd.s32 1, %s3392_s28  ;;  %s59_s14 = sadd.s32 1, %s3384_s26 }
  0x77   : > { %p50_p13 = scmp.ge.s32.totalorder %s48_s22, 2  ;;  %p66_p1 = scmp.ne.s32.totalorder %s3384_s26, %s3380_s25 }
  0x78   : > { %p67_p2 = scmp.eq.s32.totalorder %s3396_s29, 0  ;;  %p2916_p4 = scmp.lt.s32.totalorder %s3396_s29, 2 }
  0x79   : > { %s4336_s22 = smov (%p50_p13, %s48_s22), 0  ;;  %p4274_p8 = scmp.eq.s32.totalorder %s3487_s30, 1 }
  0x7a   : > { %p68_p6 = por %p67_p2, %p66_p1  ;;  %s52_s5 = ssub.s32 %s3392_s28, %s4336_s22 }
  0x7b   : > { %p3618_p10 = por %p4274_p8, %p66_p1  ;;  %s352_s10 = sand.u32 1, %s3384_s26  }
  0x7c   : > { %p57_p12 = scmp.eq.s32.totalorder %s52_s5, 0  ;;  %s2564_s24 = sshll.u32 %s352_s10, 7 }
  0x7d   : > { %s2715_s8 = sshll.u32 %s3392_s28, 11  ;;  %s4276_s0 = sld [smem:[#allocation42_spill]] }
  0x7e   : > { %s3627_s7 = scalar_select %p57_p12, %s3384_s26, %s59_s14  }
  0x7f   : > { %s356_s19 = scalar_lea.vmem [#allocation3], %s2564_s24  ;;  %p3636_p11 = pnand %p2916_p4, %p68_p6 }
  0x80   : > { %s368_s21 = sshll.u32 %s356_s19, 4  ;;  %s3642_s23 = scalar_lea.sflag [#allocation4], %s352_s10  ;;  %s3640_s21 = int_to_ptr.vmem [resolvable:$true] %s368_s21 }
  0x81   : > { %p3218_p3 = pneg %p3636_p11 }
  0x83   : > { %s3632_s20 = scalar_lea.hbm %s4276_s0, %s2715_s8  ;;  %s3221_s5 = scalar_lea.hbm %s4276_s0, 4096 }
  0x84   : > { %s3216_s15 = scalar_lea.hbm %s3632_s20, 2048  ;;  %p3222_p9 = scmp.lt.u32.totalorder %s3632_s20, %s4276_s0 }
  0x85   : > { %p3217_p0 = scmp.ne.s32.totalorder %s3632_s20, %s3216_s15  ;;  %p3223_p13 = scmp.lt.u32.totalorder %s3221_s5, %s3216_s15 }
  0x86   : > { %p3225_p2 = scmp.lt.u32.totalorder %s3216_s15, %s3632_s20 }
  0x87   : > { %p3219_p5 = pnand %p3218_p3, %p3217_p0  ;;  %p3224_p1 = por %p3223_p13, %p3222_p9 }
  0x89   : > { %p3220_p7 = pneg %p3219_p5  ;;  %p3226_p4 = por %p3225_p2, %p3224_p1 }
  0x8b   : > { %p3227_p6 = pnand %p3226_p4, %p3220_p7 }
  0x8d   : > { %3230 = shalt.err (!%p3227_p6)
}
  0x8e   : > { %s3231_s10 = scalar_lea.vmem %s3640_s21, 2048  ;;  %s3406_s17 = smov [#allocation3]  }
  0x8f   : > { %p3232_p8 = scmp.ne.s32.totalorder %s3640_s21, %s3231_s10  ;;  %s3236_s18 = sshll.u32 %s3406_s17, 4  ;;  %s3237_s18 = int_to_ptr.vmem [resolvable:$false] %s3236_s18 }
  0x90   : > { %s3238_s19 = scalar_lea.vmem %s3237_s18, 4096  ;;  %p3239_p5 = scmp.lt.s32.totalorder %s3640_s21, %s3237_s18 }
  0x91   : > { %p3234_p12 = pnand %p3232_p8, %p3218_p3  ;;  %p3240_p9 = scmp.lt.s32.totalorder %s3238_s19, %s3231_s10 }
  0x93   : > { %p3235_p0 = pneg %p3234_p12  ;;  %p3241_p13 = por %p3240_p9, %p3239_p5 }
  0x95   : > { %p3242_p1 = pnand %p3241_p13, %p3235_p0 }
  0x97   : > { %3245 = shalt.err (!%p3242_p1)
}
  0x98   : > { %s3407_s15 = smov 128   ;;  %s3408_s16 = smov 8  }
  0x99   : > { %2901 = dma.hbm_to_vmem [thread:$0]  (!%p3636_p11), %s3632_s20, 2048, %s3640_s21, %s3642_s23, %s3407_s15, %s3407_s15, %s3408_s16  }
  0x9a   : > { %p4278_p3 = scmp.ne.s32.totalorder %s4270_s11, 0 }
  0x9c   : > { %380 = sbr.rel (%p4278_p3) target bundleno = 730 (0x2da), region = 40 }
  0xa3   : > { %s3673_s14 = sand.u32 1, %s3380_s25   ;;  %p4279_p7 = scmp.ne.s32.totalorder %s4267_s9, 0 }
  0xa4   : > { %s2568_s5 = sshll.u32 %s3673_s14, 7  ;;  %s383_s24 = scalar_lea.sflag [#allocation4], %s3673_s14 }
  0xa5   : > { %s3679_s8 = scalar_lea.vmem [#allocation3], %s2568_s5 }
  0xa6   : > { %3355 = dma.done.wait (%p4279_p7), %s383_s24, 2048  }
  0xa7   : > { %3357 = vsyncadd (%p4279_p7), %s383_s24, 4294965248  ;;  %p4280_p11 = scmp.eq.s32.totalorder %s3487_s30, 0 }
  0xa9   : > { %3359 = dma.done.wait (%p4280_p11), [#allocation7], 14336   ;;  %p4281_p2 = pmov %p4280_p11 }
  0xab   : > { %3361 = vsyncadd (%p4281_p2), [#allocation7], 4294952960  ;;  %p4282_p4 = pmov %p4281_p2 }
  0xac   : > { %p4283_p6 = pmov %p4281_p2 }
  0xad   : > { %3363 = dma.done.wait (%p4282_p4), [#allocation10], 12288  }
  0xae   : > { %3365 = vsyncadd (%p4283_p6), [#allocation10], 4294955008  ;;  %v2984_v0 = vld [vmem:[#allocation6 + $0x4] ss:$16 sps:$4 sm:$0xff]   ;;  %v2986_v1 = vld [vmem:[#allocation6 + $0xc] ss:$16 sps:$4 sm:$0xff]  }
  0xaf   : > { %1064 = vmatprep.subr.bf16.mxu0 %v2984_v0  ;;  %v2988_v2 = vld [vmem:[#allocation6] ss:$16 sps:$4 sm:$0xff]   ;;  %v2989_v3 = vld [vmem:[#allocation6 + $0x8] ss:$16 sps:$4 sm:$0xff]   ;;  %1177 = vmatprep.subr.bf16.mxu1 %v2986_v1  ;;  %v2990_v4 = vld [vmem:[#allocation6 + $0x24] ss:$16 sps:$4 sm:$0xff]  }
  0xb0   : > { %1065 = vmatpush1.bf16.msra.mxu0 %v2988_v2  ;;  %1178 = vmatpush1.bf16.msra.mxu1 %v2989_v3  ;;  %v2992_v5 = vld [vmem:[#allocation6 + $0x2c] ss:$16 sps:$4 sm:$0xff]   ;;  %v2994_v6 = vld [vmem:[#allocation6 + $0x20] ss:$16 sps:$4 sm:$0xff]   ;;  %v2995_v7 = vld [vmem:[#allocation6 + $0x28] ss:$16 sps:$4 sm:$0xff]  }
  0xb1   : > { %1066 = vmatprep.subr.bf16.mxu0 %v2990_v4  ;;  %1179 = vmatprep.subr.bf16.mxu1 %v2992_v5  ;;  %v2996_v8 = vld [vmem:[#allocation6 + $0x44] ss:$16 sps:$4 sm:$0xff]   ;;  %v2998_v9 = vld [vmem:[#allocation6 + $0x4c] ss:$16 sps:$4 sm:$0xff]   ;;  %v3000_v10 = vld [vmem:[#allocation6 + $0x40] ss:$16 sps:$4 sm:$0xff]  }
  0xb2   : > { %v3001_v11 = vld [vmem:[#allocation6 + $0x48] ss:$16 sps:$4 sm:$0xff]   ;;  %v3002_v12 = vld [vmem:[#allocation6 + $0x64] ss:$16 sps:$4 sm:$0xff]   ;;  %v3004_v13 = vld [vmem:[#allocation6 + $0x6c] ss:$16 sps:$4 sm:$0xff]  }
  0xb3   : > { %v3006_v14 = vld [vmem:[#allocation6 + $0x60] ss:$16 sps:$4 sm:$0xff]   ;;  %v3007_v15 = vld [vmem:[#allocation6 + $0x68] ss:$16 sps:$4 sm:$0xff]   ;;  %v3008_v16 = vld [vmem:[#allocation6 + $0x84] ss:$16 sps:$4 sm:$0xff]  }
  0xb4   : > { %1067 = vmatpush1.bf16.msra.mxu0 %v2994_v6  ;;  %1180 = vmatpush1.bf16.msra.mxu1 %v2995_v7  ;;  %v3010_v17 = vld [vmem:[#allocation6 + $0x8c] ss:$16 sps:$4 sm:$0xff]   ;;  %v3012_v18 = vld [vmem:[#allocation6 + $0x80] ss:$16 sps:$4 sm:$0xff]   ;;  %v3013_v19 = vld [vmem:[#allocation6 + $0x88] ss:$16 sps:$4 sm:$0xff]  }
  0xb5   : > { %1068 = vmatprep.subr.bf16.mxu0 %v2996_v8  ;;  %1181 = vmatprep.subr.bf16.mxu1 %v2998_v9  ;;  %v3014_v20 = vld [vmem:[#allocation6 + $0xa4] ss:$16 sps:$4 sm:$0xff]   ;;  %v3016_v21 = vld [vmem:[#allocation6 + $0xac] ss:$16 sps:$4 sm:$0xff]   ;;  %v3018_v22 = vld [vmem:[#allocation6 + $0xa0] ss:$16 sps:$4 sm:$0xff]  }
  0xb6   : > { %v3019_v23 = vld [vmem:[#allocation6 + $0xa8] ss:$16 sps:$4 sm:$0xff]   ;;  %v3020_v24 = vld [vmem:[#allocation6 + $0xc4] ss:$16 sps:$4 sm:$0xff]   ;;  %v3022_v25 = vld [vmem:[#allocation6 + $0xcc] ss:$16 sps:$4 sm:$0xff]  }
  0xb7   : > { %v3024_v26 = vld [vmem:[#allocation6 + $0xc0] ss:$16 sps:$4 sm:$0xff]   ;;  %v3025_v27 = vld [vmem:[#allocation6 + $0xc8] ss:$16 sps:$4 sm:$0xff]   ;;  %v3026_v28 = vld [vmem:[#allocation6 + $0xe4] ss:$16 sps:$4 sm:$0xff]  }
  0xb8   : > { %1069 = vmatpush1.bf16.msra.mxu0 %v3000_v10  ;;  %1182 = vmatpush1.bf16.msra.mxu1 %v3001_v11  ;;  %v3028_v29 = vld [vmem:[#allocation6 + $0xec] ss:$16 sps:$4 sm:$0xff]   ;;  %v3030_v30 = vld [vmem:[#allocation6 + $0xe0] ss:$16 sps:$4 sm:$0xff]   ;;  %v3031_v31 = vld [vmem:[#allocation6 + $0xe8] ss:$16 sps:$4 sm:$0xff]  }
  0xb9   : > { %1070 = vmatprep.subr.bf16.mxu0 %v3002_v12  ;;  %1183 = vmatprep.subr.bf16.mxu1 %v3004_v13  ;;  %v3032_v32 = vld [vmem:[#allocation6 + $0x104] ss:$16 sps:$4 sm:$0xff]   ;;  %v3034_v33 = vld [vmem:[#allocation6 + $0x10c] ss:$16 sps:$4 sm:$0xff]   ;;  %v3036_v34 = vld [vmem:[#allocation6 + $0x100] ss:$16 sps:$4 sm:$0xff]  }
  0xba   : > { %v3037_v35 = vld [vmem:[#allocation6 + $0x108] ss:$16 sps:$4 sm:$0xff]   ;;  %v3038_v36 = vld [vmem:[#allocation6 + $0x124] ss:$16 sps:$4 sm:$0xff]   ;;  %v3040_v37 = vld [vmem:[#allocation6 + $0x12c] ss:$16 sps:$4 sm:$0xff]  }
  0xbb   : > { %v3042_v38 = vld [vmem:[#allocation6 + $0x120] ss:$16 sps:$4 sm:$0xff]   ;;  %v3043_v39 = vld [vmem:[#allocation6 + $0x128] ss:$16 sps:$4 sm:$0xff]   ;;  %v3044_v40 = vld [vmem:[#allocation6 + $0x144] ss:$16 sps:$4 sm:$0xff]  }
  0xbc   : > { %1071 = vmatpush1.bf16.msra.mxu0 %v3006_v14  ;;  %1184 = vmatpush1.bf16.msra.mxu1 %v3007_v15  ;;  %v3046_v41 = vld [vmem:[#allocation6 + $0x14c] ss:$16 sps:$4 sm:$0xff]   ;;  %v3048_v42 = vld [vmem:[#allocation6 + $0x140] ss:$16 sps:$4 sm:$0xff]   ;;  %v3049_v43 = vld [vmem:[#allocation6 + $0x148] ss:$16 sps:$4 sm:$0xff]  }
  0xbd   : > { %1072 = vmatprep.subr.bf16.mxu0 %v3008_v16  ;;  %1185 = vmatprep.subr.bf16.mxu1 %v3010_v17  ;;  %v3050_v44 = vld [vmem:[#allocation6 + $0x164] ss:$16 sps:$4 sm:$0xff]   ;;  %v3052_v45 = vld [vmem:[#allocation6 + $0x16c] ss:$16 sps:$4 sm:$0xff]   ;;  %v3054_v46 = vld [vmem:[#allocation6 + $0x160] ss:$16 sps:$4 sm:$0xff]  }
  0xbe   : > { %v3055_v47 = vld [vmem:[#allocation6 + $0x168] ss:$16 sps:$4 sm:$0xff]   ;;  %v3082_v48 = vld [vmem:[%s3679_s8 + $0x4] ss:$8 sps:$4 sm:$0xff]   ;;  %v3060_v51 = vld [vmem:[#allocation6 + $0x180] ss:$16 sps:$4 sm:$0xff]  }
  0xbf   : > { %v3056_v49 = vld [vmem:[#allocation6 + $0x184] ss:$16 sps:$4 sm:$0xff]   ;;  %v3058_v50 = vld [vmem:[#allocation6 + $0x18c] ss:$16 sps:$4 sm:$0xff]   ;;  %1096 = vmatprep.mubr.bf16.mxu0 %v3082_v48  ;;  %1209 = vmatprep.mubr.bf16.mxu1 %v3082_v48  ;;  %v3061_v52 = vld [vmem:[#allocation6 + $0x188] ss:$16 sps:$4 sm:$0xff]  }
  0xc0   : > { %1073 = vmatpush1.bf16.msra.mxu0 %v3012_v18  ;;  %1186 = vmatpush1.bf16.msra.mxu1 %v3013_v19  ;;  %v3062_v53 = vld [vmem:[#allocation6 + $0x1a4] ss:$16 sps:$4 sm:$0xff]   ;;  %v3064_v54 = vld [vmem:[#allocation6 + $0x1ac] ss:$16 sps:$4 sm:$0xff]   ;;  %v3066_v55 = vld [vmem:[#allocation6 + $0x1a0] ss:$16 sps:$4 sm:$0xff]  }
  0xc1   : > { %1074 = vmatprep.subr.bf16.mxu0 %v3014_v20  ;;  %1187 = vmatprep.subr.bf16.mxu1 %v3016_v21  ;;  %v3067_v56 = vld [vmem:[#allocation6 + $0x1a8] ss:$16 sps:$4 sm:$0xff]   ;;  %v3068_v57 = vld [vmem:[#allocation6 + $0x1c4] ss:$16 sps:$4 sm:$0xff]   ;;  %v3070_v58 = vld [vmem:[#allocation6 + $0x1cc] ss:$16 sps:$4 sm:$0xff]  }
  0xc2   : > { %v3072_v59 = vld [vmem:[#allocation6 + $0x1c0] ss:$16 sps:$4 sm:$0xff]   ;;  %v3073_v60 = vld [vmem:[#allocation6 + $0x1c8] ss:$16 sps:$4 sm:$0xff]   ;;  %v3074_v61 = vld [vmem:[#allocation6 + $0x1e4] ss:$16 sps:$4 sm:$0xff]  }
  0xc3   : > { %v3076_v62 = vld [vmem:[#allocation6 + $0x1ec] ss:$16 sps:$4 sm:$0xff]   ;;  %v3078_v63 = vld [vmem:[#allocation6 + $0x1e0] ss:$16 sps:$4 sm:$0xff]   ;;  %v3079_v0 = vld [vmem:[#allocation6 + $0x1e8] ss:$16 sps:$4 sm:$0xff]  }
  0xc4   : > { %1075 = vmatpush1.bf16.msra.mxu0 %v3018_v22  ;;  %1188 = vmatpush1.bf16.msra.mxu1 %v3019_v23  ;;  %v3080_v1 = vld [vmem:[%s3679_s8] ss:$8 sps:$4 sm:$0xff]   ;;  %v3083_v2 = vld [vmem:[%s3679_s8 + $0x14] ss:$8 sps:$4 sm:$0xff]   ;;  %v3085_v3 = vld [vmem:[%s3679_s8 + $0x10] ss:$8 sps:$4 sm:$0xff]  }
  0xc5   : > { %1076 = vmatprep.subr.bf16.mxu0 %v3020_v24  ;;  %1189 = vmatprep.subr.bf16.mxu1 %v3022_v25  ;;  %v3086_v4 = vld [vmem:[%s3679_s8 + $0x24] ss:$8 sps:$4 sm:$0xff]   ;;  %v3088_v5 = vld [vmem:[%s3679_s8 + $0x20] ss:$8 sps:$4 sm:$0xff]   ;;  %v3089_v6 = vld [vmem:[%s3679_s8 + $0x34] ss:$8 sps:$4 sm:$0xff]  }
  0xc6   : > { %v3091_v7 = vld [vmem:[%s3679_s8 + $0x30] ss:$8 sps:$4 sm:$0xff]   ;;  %v3092_v8 = vld [vmem:[%s3679_s8 + $0x44] ss:$8 sps:$4 sm:$0xff]   ;;  %v3094_v9 = vld [vmem:[%s3679_s8 + $0x40] ss:$8 sps:$4 sm:$0xff]  }
  0xc7   : > { %v3095_v10 = vld [vmem:[%s3679_s8 + $0x54] ss:$8 sps:$4 sm:$0xff]   ;;  %v3097_v11 = vld [vmem:[%s3679_s8 + $0x50] ss:$8 sps:$4 sm:$0xff]   ;;  %v3098_v12 = vld [vmem:[%s3679_s8 + $0x64] ss:$8 sps:$4 sm:$0xff]  }
  0xc8   : > { %1077 = vmatpush1.bf16.msra.mxu0 %v3024_v26  ;;  %1190 = vmatpush1.bf16.msra.mxu1 %v3025_v27  ;;  %v3100_v13 = vld [vmem:[%s3679_s8 + $0x60] ss:$8 sps:$4 sm:$0xff]   ;;  %v3101_v14 = vld [vmem:[%s3679_s8 + $0x74] ss:$8 sps:$4 sm:$0xff]   ;;  %v3103_v15 = vld [vmem:[%s3679_s8 + $0x70] ss:$8 sps:$4 sm:$0xff]  }
  0xc9   : > { %1078 = vmatprep.subr.bf16.mxu0 %v3026_v28  ;;  %1191 = vmatprep.subr.bf16.mxu1 %v3028_v29  ;;  %s2574_s9 = sshll.u32 %s3673_s14, 6  ;;  %s4260_s11 = smov 64  }
  0xca   : > { %s3730_s20 = scalar_lea.vmem [#allocation15], %s2574_s9  ;;  %s3942_s21 = scalar_lea.vmem [#allocation12], %s2568_s5 }
  0xcb   : > { %s3961_s12 = scalar_lea.vmem [#allocation13], %s2574_s9  ;;  %s2293_s10 = sand.u32 1, %s3487_s30  }
  0xcc   : > { %1079 = vmatpush1.bf16.msra.mxu0 %v3030_v30  ;;  %1192 = vmatpush1.bf16.msra.mxu1 %v3031_v31  ;;  %s2333_s23 = sshll.u32 %s3961_s12, 4  ;;  %s2765_s17 = sshll.u32 %s3388_s27, 10  ;;  %s4097_s23 = int_to_ptr.vmem [resolvable:$true] %s2333_s23 }
  0xcd   : > { %1080 = vmatprep.subr.bf16.mxu0 %v3032_v32  ;;  %1193 = vmatprep.subr.bf16.mxu1 %v3034_v33  ;;  %s2351_s18 = sshll.u32 %s3730_s20, 4  ;;  %s2764_s19 = sshll.u32 %s3388_s27, 11  ;;  %s4115_s18 = int_to_ptr.vmem [resolvable:$true] %s2351_s18 }
  0xce   : > { %s2315_s15 = sshll.u32 %s3942_s21, 4  ;;  %s4105_s5 = scalar_lea.hbm %s4231_s6, %s2765_s17  ;;  %s4112_s15 = int_to_ptr.vmem [resolvable:$true] %s2315_s15 }
  0xcf   : > { %s4322_s9 = sld [smem:[#allocation44_spill]]  ;;  %s4323_s16 = sld [smem:[#allocation45_spill]] }
  0xd0   : > { %1081 = vmatpush1.bf16.msra.mxu0 %v3036_v34  ;;  %1194 = vmatpush1.bf16.msra.mxu1 %v3037_v35  ;;  %s4124_s0 = scalar_lea.sflag [#allocation14], %s2293_s10  ;;  %s3246_s1 = scalar_lea.vmem %s4097_s23, 1024 }
  0xd1   : > { %1082 = vmatprep.subr.bf16.mxu0 %v3038_v36  ;;  %1195 = vmatprep.subr.bf16.mxu1 %v3040_v37  ;;  %p3247_p8 = scmp.ne.s32.totalorder %s4097_s23, %s3246_s1 }
  0xd3   : > { %p3248_p12 = pnand %p3247_p8, %p3618_p10 }
  0xd4   : > { %1083 = vmatpush1.bf16.msra.mxu0 %v3042_v38  ;;  %1196 = vmatpush1.bf16.msra.mxu1 %v3043_v39 }
  0xd5   : > { %1084 = vmatprep.subr.bf16.mxu0 %v3044_v40  ;;  %1197 = vmatprep.subr.bf16.mxu1 %v3046_v41  ;;  %s4110_s27 = scalar_lea.hbm %s4322_s9, %s2764_s19  ;;  %p3249_p0 = pneg %p3248_p12 }
  0xd6   : > { %s3410_s19 = smov [#allocation13]  }
  0xd7   : > { %s3250_s24 = sshll.u32 %s3410_s19, 4  ;;  %s3251_s24 = int_to_ptr.vmem [resolvable:$false] %s3250_s24 }
  0xd8   : > { %1085 = vmatpush1.bf16.msra.mxu0 %v3048_v42  ;;  %1198 = vmatpush1.bf16.msra.mxu1 %v3049_v43  ;;  %s3252_s8 = scalar_lea.vmem %s3251_s24, 2048  ;;  %p3253_p5 = scmp.lt.s32.totalorder %s4097_s23, %s3251_s24 }
  0xd9   : > { %1086 = vmatprep.subr.bf16.mxu0 %v3050_v44  ;;  %1199 = vmatprep.subr.bf16.mxu1 %v3052_v45  ;;  %p3254_p9 = scmp.lt.s32.totalorder %s3252_s8, %s3246_s1 }
  0xdb   : > { %p3255_p13 = por %p3254_p9, %p3253_p5 }
  0xdc   : > { %1087 = vmatpush1.bf16.msra.mxu0 %v3054_v46  ;;  %1200 = vmatpush1.bf16.msra.mxu1 %v3055_v47 }
  0xdd   : > { %1088 = vmatprep.subr.bf16.mxu0 %v3056_v49  ;;  %1201 = vmatprep.subr.bf16.mxu1 %v3058_v50  ;;  %p3256_p1 = pnand %p3255_p13, %p3249_p0 }
  0xe0   : > { %1089 = vmatpush1.bf16.msra.mxu0 %v3060_v51  ;;  %1202 = vmatpush1.bf16.msra.mxu1 %v3061_v52 }
  0xe1   : > { %1090 = vmatprep.subr.bf16.mxu0 %v3062_v53  ;;  %1203 = vmatprep.subr.bf16.mxu1 %v3064_v54 }
  0xe4   : > { %1091 = vmatpush1.bf16.msra.mxu0 %v3066_v55  ;;  %1204 = vmatpush1.bf16.msra.mxu1 %v3067_v56 }
  0xe5   : > { %1092 = vmatprep.subr.bf16.mxu0 %v3068_v57  ;;  %1205 = vmatprep.subr.bf16.mxu1 %v3070_v58 }
  0xe8   : > { %1093 = vmatpush1.bf16.msra.mxu0 %v3072_v59  ;;  %1206 = vmatpush1.bf16.msra.mxu1 %v3073_v60 }
  0xe9   : > { %1094 = vmatprep.subr.bf16.mxu0 %v3074_v61  ;;  %1207 = vmatprep.subr.bf16.mxu1 %v3076_v62 }
  0xec   : > { %1095 = vmatpush1.bf16.msra.mxu0 %v3078_v63  ;;  %1208 = vmatpush1.bf16.msra.mxu1 %v3079_v0 }
  0xef   : > { %1097 = vmatmul.mubr.bf16.vlgmr.msra.gmra.mrb[0].mxu0 %v3080_v1  ;;  %1210 = vmatmul.mubr.bf16.vlgmr.msra.gmra.mrb[0].mxu1 %v3080_v1 }
  0xf0   : > { %1106 = vmatprep.mubr.bf16.mxu0 %v3083_v2  ;;  %1219 = vmatprep.mubr.bf16.mxu1 %v3083_v2 }
  0xf7   : > { %1107 = vmatmul.mubr.bf16.gmra.mrb[4].mxu0 %v3085_v3  ;;  %1220 = vmatmul.mubr.bf16.gmra.mrb[4].mxu1 %v3085_v3 }
  0xf8   : > { %1116 = vmatprep.mubr.bf16.mxu0 %v3086_v4  ;;  %1229 = vmatprep.mubr.bf16.mxu1 %v3086_v4 }
  0xff   : > { %1117 = vmatmul.mubr.bf16.gmra.mrb[8].mxu0 %v3088_v5  ;;  %1230 = vmatmul.mubr.bf16.gmra.mrb[8].mxu1 %v3088_v5 }
 0x100   : > { %1126 = vmatprep.mubr.bf16.mxu0 %v3089_v6  ;;  %1239 = vmatprep.mubr.bf16.mxu1 %v3089_v6 }
 0x107   : > { %1127 = vmatmul.mubr.bf16.gmra.mrb[12].mxu0 %v3091_v7  ;;  %1240 = vmatmul.mubr.bf16.gmra.mrb[12].mxu1 %v3091_v7 }
 0x108   : > { %1136 = vmatprep.mubr.bf16.mxu0 %v3092_v8  ;;  %1249 = vmatprep.mubr.bf16.mxu1 %v3092_v8 }
 0x10f   : > { %1137 = vmatmul.mubr.bf16.gmra.mrb[16].mxu0 %v3094_v9  ;;  %1250 = vmatmul.mubr.bf16.gmra.mrb[16].mxu1 %v3094_v9 }
 0x110   : > { %1146 = vmatprep.mubr.bf16.mxu0 %v3095_v10  ;;  %1259 = vmatprep.mubr.bf16.mxu1 %v3095_v10 }
 0x117   : > { %1147 = vmatmul.mubr.bf16.gmra.mrb[20].mxu0 %v3097_v11  ;;  %1260 = vmatmul.mubr.bf16.gmra.mrb[20].mxu1 %v3097_v11 }
 0x118   : > { %1156 = vmatprep.mubr.bf16.mxu0 %v3098_v12  ;;  %1269 = vmatprep.mubr.bf16.mxu1 %v3098_v12 }
 0x11f   : > { %1157 = vmatmul.mubr.bf16.gmra.mrb[24].mxu0 %v3100_v13  ;;  %1270 = vmatmul.mubr.bf16.gmra.mrb[24].mxu1 %v3100_v13 }
 0x120   : > { %1166 = vmatprep.mubr.bf16.mxu0 %v3101_v14  ;;  %1279 = vmatprep.mubr.bf16.mxu1 %v3101_v14 }
 0x127   : > { %1167 = vmatmul.mubr.bf16.gmra.mrb[28].mxu0 %v3103_v15  ;;  %1280 = vmatmul.mubr.bf16.gmra.mrb[28].mxu1 %v3103_v15 }
 0x1c2   : > { %v3709_v16 = vpop.f32.mrb[0].mxu0  ;;  %v3711_v17 = vpop.f32.mrb[0].mxu1 }
 0x1c3   : > { %v1213_v18 = vpop.f32.mrb[1].mxu1  ;;  %1581 = vrot.lane.b32.xlu0 %v3709_v16, %s4260_s11  ;;  %v3716_v19 = vpop.f32.mrb[1].mxu0 }
 0x1c4   : > { %v3718_v20 = vpop.f32.mrb[2].mxu0  ;;  %v3720_v21 = vpop.f32.mrb[2].mxu1 }
 0x1c5   : > { %1647 = vrot.lane.b32.xlu1 %v3720_v21, %s4260_s11  ;;  %v3724_v22 = vpop.f32.mrb[3].mxu0  ;;  %v1217_v23 = vpop.f32.mrb[3].mxu1 }
 0x1c6   : > { %v2810_v24 = vpack.c.bf16 %v1217_v23, %v1213_v18 }
 0x1c7   : > { %1645 = vrot.lane.b32.xlu0 %v3711_v17, %s4260_s11 }
 0x1c8   : > { %2811 = vst [vmem:[%s3730_s20] sm:$0xff] %v2810_v24  }
 0x1c9   : > { %1615 = vrot.lane.b32.xlu1 %v3724_v22, %s4260_s11 }
 0x1ca   : > { %v3735_v25 = vpop.f32.mrb[4].mxu0  ;;  %v3737_v26 = vpop.f32.mrb[4].mxu1 }
 0x1cb   : > { %1613 = vrot.lane.b32.xlu0 %v3716_v19, %s4260_s11  ;;  %v3741_v27 = vpop.f32.mrb[5].mxu0  ;;  %v1223_v28 = vpop.f32.mrb[5].mxu1 }
 0x1cc   : > { %v3743_v29 = vpop.f32.mrb[6].mxu0  ;;  %v3745_v30 = vpop.f32.mrb[6].mxu1 }
 0x1cd   : > { %1585 = vrot.lane.b32.xlu1 %v3735_v25, %s4260_s11  ;;  %v3749_v31 = vpop.f32.mrb[7].mxu0  ;;  %v1227_v32 = vpop.f32.mrb[7].mxu1 }
 0x1ce   : > { %v2815_v33 = vpack.c.bf16 %v1227_v32, %v1223_v28 }
 0x1cf   : > { %1583 = vrot.lane.b32.xlu0 %v3718_v20, %s4260_s11 }
 0x1d0   : > { %2854 = vst [vmem:[%s3730_s20 + $0x8] sm:$0xff] %v2815_v33  }
 0x1d1   : > { %1587 = vrot.lane.b32.xlu1 %v3743_v29, %s4260_s11 }
 0x1d2   : > { %v3756_v34 = vpop.f32.mrb[8].mxu0  ;;  %v3758_v35 = vpop.f32.mrb[8].mxu1 }
 0x1d3   : > { %1649 = vrot.lane.b32.xlu0 %v3737_v26, %s4260_s11  ;;  %v3762_v36 = vpop.f32.mrb[9].mxu0  ;;  %v1233_v37 = vpop.f32.mrb[9].mxu1 }
 0x1d4   : > { %v3764_v38 = vpop.f32.mrb[10].mxu0  ;;  %v3766_v39 = vpop.f32.mrb[10].mxu1 }
 0x1d5   : > { %1651 = vrot.lane.b32.xlu1 %v3745_v30, %s4260_s11  ;;  %v3770_v40 = vpop.f32.mrb[11].mxu0  ;;  %v1237_v41 = vpop.f32.mrb[11].mxu1 }
 0x1d6   : > { %v2820_v42 = vpack.c.bf16 %v1237_v41, %v1233_v37 }
 0x1d7   : > { %1617 = vrot.lane.b32.xlu0 %v3741_v27, %s4260_s11 }
 0x1d8   : > { %2855 = vst [vmem:[%s3730_s20 + $0x10] sm:$0xff] %v2820_v42   ;;  %v1677_v42 = vlaneseq }
 0x1d9   : > { %1619 = vrot.lane.b32.xlu1 %v3749_v31, %s4260_s11 }
 0x1da   : > { %v3777_v43 = vpop.f32.mrb[12].mxu0  ;;  %v3779_v44 = vpop.f32.mrb[12].mxu1 }
 0x1db   : > { %1589 = vrot.lane.b32.xlu0 %v3756_v34, %s4260_s11  ;;  %v3783_v45 = vpop.f32.mrb[13].mxu0  ;;  %v1243_v46 = vpop.f32.mrb[13].mxu1 }
 0x1dc   : > { %v3785_v47 = vpop.f32.mrb[14].mxu0  ;;  %v3787_v48 = vpop.f32.mrb[14].mxu1 }
 0x1dd   : > { %1591 = vrot.lane.b32.xlu1 %v3764_v38, %s4260_s11  ;;  %v3791_v49 = vpop.f32.mrb[15].mxu0  ;;  %v1247_v50 = vpop.f32.mrb[15].mxu1 }
 0x1de   : > { %v2825_v51 = vpack.c.bf16 %v1247_v50, %v1243_v46  ;;  %v3914_v50 = vand.u32 127, %v1677_v42 }
 0x1df   : > { %1653 = vrot.lane.b32.xlu0 %v3758_v35, %s4260_s11 }
 0x1e0   : > { %2856 = vst [vmem:[%s3730_s20 + $0x18] sm:$0xff] %v2825_v51   ;;  %vm1679_vm0 = vcmp.lt.s32.totalorder %v3914_v50, 64 }
 0x1e1   : > { %1655 = vrot.lane.b32.xlu1 %v3766_v39, %s4260_s11 }
 0x1e2   : > { %v3798_v52 = vpop.f32.mrb[16].mxu0  ;;  %v3800_v53 = vpop.f32.mrb[16].mxu1 }
 0x1e3   : > { %1621 = vrot.lane.b32.xlu0 %v3762_v36, %s4260_s11  ;;  %v3804_v54 = vpop.f32.mrb[17].mxu0  ;;  %v1253_v55 = vpop.f32.mrb[17].mxu1 }
 0x1e4   : > { %v3806_v56 = vpop.f32.mrb[18].mxu0  ;;  %v3808_v57 = vpop.f32.mrb[18].mxu1 }
 0x1e5   : > { %1623 = vrot.lane.b32.xlu1 %v3770_v40, %s4260_s11  ;;  %v3812_v58 = vpop.f32.mrb[19].mxu0  ;;  %v1257_v59 = vpop.f32.mrb[19].mxu1 }
 0x1e6   : > { %4284 = vst [vmem:[#allocation23_spill] sm:$0xff] %v3812_v58  ;;  %v2830_v60 = vpack.c.bf16 %v1257_v59, %v1253_v55  ;;  %v1485_v59 = vld [vmem:[#allocation8] sm:$0xff] }
 0x1e7   : > { %1593 = vrot.lane.b32.xlu0 %v3777_v43, %s4260_s11 }
 0x1e8   : > { %2857 = vst [vmem:[%s3730_s20 + $0x20] sm:$0xff] %v2830_v60   ;;  %v1487_v60 = vld [vmem:[#allocation8 + $0x10] sm:$0xff] }
 0x1e9   : > { %1595 = vrot.lane.b32.xlu1 %v3785_v47, %s4260_s11 }
 0x1ea   : > { %v3819_v61 = vpop.f32.mrb[20].mxu0  ;;  %v3821_v62 = vpop.f32.mrb[20].mxu1 }
 0x1eb   : > { %4285 = vst [vmem:[#allocation24_spill] sm:$0xff] %v3819_v61  ;;  %4286 = vst [vmem:[#allocation25_spill] sm:$0xff] %v3821_v62  ;;  %1657 = vrot.lane.b32.xlu0 %v3779_v44, %s4260_s11  ;;  %v3825_v63 = vpop.f32.mrb[21].mxu0  ;;  %v1263_v0 = vpop.f32.mrb[21].mxu1 }
 0x1ec   : > { %4287 = vst [vmem:[#allocation26_spill] sm:$0xff] %v3825_v63  ;;  %v3827_v1 = vpop.f32.mrb[22].mxu0  ;;  %v3829_v2 = vpop.f32.mrb[22].mxu1 }
 0x1ed   : > { %4288 = vst [vmem:[#allocation27_spill] sm:$0xff] %v3827_v1  ;;  %4289 = vst [vmem:[#allocation28_spill] sm:$0xff] %v3829_v2  ;;  %1659 = vrot.lane.b32.xlu1 %v3787_v48, %s4260_s11  ;;  %v3833_v3 = vpop.f32.mrb[23].mxu0  ;;  %v1267_v4 = vpop.f32.mrb[23].mxu1 }
 0x1ee   : > { %4290 = vst [vmem:[#allocation29_spill] sm:$0xff] %v3833_v3  ;;  %v2835_v5 = vpack.c.bf16 %v1267_v4, %v1263_v0  ;;  %v1486_v0 = vld [vmem:[#allocation8 + $0x8] sm:$0xff] }
 0x1ef   : > { %1625 = vrot.lane.b32.xlu0 %v3783_v45, %s4260_s11 }
 0x1f0   : > { %2858 = vst [vmem:[%s3730_s20 + $0x28] sm:$0xff] %v2835_v5   ;;  %v1488_v5 = vld [vmem:[#allocation8 + $0x18] sm:$0xff] }
 0x1f1   : > { %1627 = vrot.lane.b32.xlu1 %v3791_v49, %s4260_s11 }
 0x1f2   : > { %v3840_v6 = vpop.f32.mrb[24].mxu0  ;;  %v3842_v7 = vpop.f32.mrb[24].mxu1 }
 0x1f3   : > { %4291 = vst [vmem:[#allocation30_spill] sm:$0xff] %v3840_v6  ;;  %4292 = vst [vmem:[#allocation31_spill] sm:$0xff] %v3842_v7  ;;  %1597 = vrot.lane.b32.xlu0 %v3798_v52, %s4260_s11  ;;  %v3846_v8 = vpop.f32.mrb[25].mxu0  ;;  %v1273_v9 = vpop.f32.mrb[25].mxu1 }
 0x1f4   : > { %4293 = vst [vmem:[#allocation32_spill] sm:$0xff] %v3846_v8  ;;  %v3848_v10 = vpop.f32.mrb[26].mxu0  ;;  %v3850_v11 = vpop.f32.mrb[26].mxu1 }
 0x1f5   : > { %4294 = vst [vmem:[#allocation33_spill] sm:$0xff] %v3848_v10  ;;  %4295 = vst [vmem:[#allocation34_spill] sm:$0xff] %v3850_v11  ;;  %1599 = vrot.lane.b32.xlu1 %v3806_v56, %s4260_s11  ;;  %v3854_v12 = vpop.f32.mrb[27].mxu0  ;;  %v1277_v13 = vpop.f32.mrb[27].mxu1 }
 0x1f6   : > { %4296 = vst [vmem:[#allocation35_spill] sm:$0xff] %v3854_v12  ;;  %v2840_v14 = vpack.c.bf16 %v1277_v13, %v1273_v9  ;;  %v1728_v9 = vld [vmem:[#allocation9] sm:$0xff]  ;;  %v1729_v13 = vld [vmem:[#allocation9 + $0x8] sm:$0xff] }
 0x1f7   : > { %1661 = vrot.lane.b32.xlu0 %v3800_v53, %s4260_s11 }
 0x1f8   : > { %2859 = vst [vmem:[%s3730_s20 + $0x30] sm:$0xff] %v2840_v14   ;;  %v1490_v14 = vld [vmem:[#allocation8 + $0x28] sm:$0xff] }
 0x1f9   : > { %1663 = vrot.lane.b32.xlu1 %v3808_v57, %s4260_s11 }
 0x1fa   : > { %v3861_v15 = vpop.f32.mrb[28].mxu0  ;;  %v3863_v18 = vpop.f32.mrb[28].mxu1 }
 0x1fb   : > { %4297 = vst [vmem:[#allocation36_spill] sm:$0xff] %v3861_v15  ;;  %4298 = vst [vmem:[#allocation37_spill] sm:$0xff] %v3863_v18  ;;  %1629 = vrot.lane.b32.xlu0 %v3804_v54, %s4260_s11  ;;  %v3867_v23 = vpop.f32.mrb[29].mxu0  ;;  %v1283_v24 = vpop.f32.mrb[29].mxu1 }
 0x1fc   : > { %4299 = vst [vmem:[#allocation38_spill] sm:$0xff] %v3867_v23  ;;  %v3869_v28 = vpop.f32.mrb[30].mxu0  ;;  %v3871_v32 = vpop.f32.mrb[30].mxu1 }
 0x1fd   : > { %4300 = vst [vmem:[#allocation39_spill] sm:$0xff] %v3869_v28  ;;  %4301 = vst [vmem:[#allocation40_spill] sm:$0xff] %v3871_v32  ;;  %1631 = vrot.lane.b32.xlu1 %v3812_v58, %s4260_s11  ;;  %v3875_v33 = vpop.f32.mrb[31].mxu0  ;;  %v1287_v37 = vpop.f32.mrb[31].mxu1 }
 0x1fe   : > { %4302 = vst [vmem:[#allocation41_spill] sm:$0xff] %v3875_v33  ;;  %v2845_v41 = vpack.c.bf16 %v1287_v37, %v1283_v24  ;;  %v1730_v24 = vld [vmem:[#allocation9 + $0x10] sm:$0xff] }
 0x1ff   : > { %1601 = vrot.lane.b32.xlu0 %v3819_v61, %s4260_s11  ;;  %v1875_v61 = vld [vmem:[#allocation11 + $0x18] sm:$0xff] }
 0x200   : > { %2860 = vst [vmem:[%s3730_s20 + $0x38] sm:$0xff] %v2845_v41   ;;  %v1732_v41 = vld [vmem:[#allocation9 + $0x20] sm:$0xff] }
 0x201   : > { %1603 = vrot.lane.b32.xlu1 %v3827_v1, %s4260_s11  ;;  %v1733_v1 = vld [vmem:[#allocation9 + $0x28] sm:$0xff] }
 0x203   : > { %1665 = vrot.lane.b32.xlu0 %v3821_v62, %s4260_s11 }
 0x205   : > { %1667 = vrot.lane.b32.xlu1 %v3829_v2, %s4260_s11 }
 0x207   : > { %1633 = vrot.lane.b32.xlu0 %v3825_v63, %s4260_s11 }
 0x209   : > { %1635 = vrot.lane.b32.xlu1 %v3833_v3, %s4260_s11 }
 0x20b   : > { %1605 = vrot.lane.b32.xlu0 %v3840_v6, %s4260_s11 }
 0x20d   : > { %1607 = vrot.lane.b32.xlu1 %v3848_v10, %s4260_s11  ;;  %v1874_v10 = vld [vmem:[#allocation11 + $0x10] sm:$0xff] }
 0x20f   : > { %1669 = vrot.lane.b32.xlu0 %v3842_v7, %s4260_s11  ;;  %v1489_v7 = vld [vmem:[#allocation8 + $0x20] sm:$0xff] }
 0x211   : > { %1671 = vrot.lane.b32.xlu1 %v3850_v11, %s4260_s11  ;;  %v1534_v11 = vmul.f32 %v1486_v0, %v3716_v19  ;;  %v1876_v19 = vld [vmem:[#allocation11 + $0x20] sm:$0xff] }
 0x213   : > { %1637 = vrot.lane.b32.xlu0 %v3846_v8, %s4260_s11 }
 0x215   : > { %1639 = vrot.lane.b32.xlu1 %v3854_v12, %s4260_s11  ;;  %v1535_v12 = vmul.f32 %v1487_v60, %v3711_v17 }
 0x217   : > { %1609 = vrot.lane.b32.xlu0 %v3861_v15, %s4260_s11 }
 0x219   : > { %1611 = vrot.lane.b32.xlu1 %v3869_v28, %s4260_s11  ;;  %v1873_v28 = vld [vmem:[#allocation11 + $0x8] sm:$0xff] }
 0x21b   : > { %1673 = vrot.lane.b32.xlu0 %v3863_v18, %s4260_s11  ;;  %v1872_v18 = vld [vmem:[#allocation11] sm:$0xff] }
 0x21d   : > { %1675 = vrot.lane.b32.xlu1 %v3871_v32, %s4260_s11  ;;  %v1533_v32 = vmul.f32 %v1485_v59, %v3709_v16  ;;  %v1536_v16 = vmul.f32 %v1488_v5, %v3718_v20  ;;  %v1538_v59 = vmul.f32 %v1490_v14, %v3720_v21 }
 0x21f   : > { %1641 = vrot.lane.b32.xlu0 %v3867_v23, %s4260_s11 }
 0x221   : > { %1643 = vrot.lane.b32.xlu1 %v3875_v33, %s4260_s11  ;;  %s4121_s11 = scalar_lea.hbm %s4323_s16, %s2765_s17 }
 0x235   : > { %v1582_v46 = vpop.permute.xlu0 %1581 }
 0x237   : > { %v1648_v51 = vpop.permute.xlu1 %1647 }
 0x239   : > { %v1646_v55 = vpop.permute.xlu0 %1645 }
 0x23a   : > { %v1712_v37 = vsel %vm1679_vm0, %v1646_v55, %v1582_v46 }
 0x23b   : > { %v1616_v4 = vpop.permute.xlu1 %1615  ;;  %v1778_v2 = vmul.f32 %v1730_v24, %v1712_v37  ;;  %v1920_v63 = vmul.f32 %v1872_v18, %v1712_v37 }
 0x23c   : > { %v1681_v42 = vsel %vm1679_vm0, %v1616_v4, %v1648_v51 }
 0x23d   : > { %v1614_v33 = vpop.permute.xlu0 %1613  ;;  %v1780_v62 = vmul.f32 %v1732_v41, %v1681_v42 }
 0x23e   : > { %v1680_v23 = vsel %vm1679_vm0, %v1614_v33, %v1646_v55  ;;  %v1696_v15 = vsel %vm1679_vm0, %v1582_v46, %v1614_v33  ;;  %v1731_v55 = vld [vmem:[#allocation9 + $0x18] sm:$0xff]  ;;  %v1877_v33 = vld [vmem:[#allocation11 + $0x28] sm:$0xff] }
 0x23f   : > { %v1776_v8 = vmul.f32 %v1728_v9, %v1696_v15  ;;  %v1777_v6 = vmul.f32 %v1729_v13, %v1680_v23  ;;  %v3928_v3 = vpop.permute.xlu1 %1585  ;;  %v1921_v60 = vmul.f32 %v1873_v28, %v1696_v15  ;;  %v1537_v9 = vmul.f32 %v1489_v7, %v3724_v22  ;;  %v1736_v28 = vld [vmem:[#allocation9 + $0x40] sm:$0xff]  ;;  %v1491_v22 = vld [vmem:[#allocation8 + $0x30] sm:$0xff]  ;;  %v1492_v7 = vld [vmem:[#allocation8 + $0x38] sm:$0xff] }
 0x240   : > { %v1922_v13 = vmul.f32 %v1874_v10, %v1680_v23  ;;  %v1493_v10 = vld [vmem:[#allocation8 + $0x40] sm:$0xff] }
 0x241   : > { %v1824_v46 = vadd.f32 %v1776_v8, %v1533_v32  ;;  %v1825_v17 = vadd.f32 %v1777_v6, %v1534_v11  ;;  %v1584_v0 = vpop.permute.xlu0 %1583  ;;  %v1826_v8 = vadd.f32 %v1778_v2, %v1535_v12  ;;  %v1828_v6 = vadd.f32 %v1780_v62, %v1537_v9  ;;  %v1495_v62 = vld [vmem:[#allocation8 + $0x50] sm:$0xff]  ;;  %v1735_v9 = vld [vmem:[#allocation9 + $0x38] sm:$0xff] }
 0x242   : > { %v1697_v20 = vsel %vm1679_vm0, %v1584_v0, %v1616_v4  ;;  %v1713_v21 = vsel %vm1679_vm0, %v1648_v51, %v1584_v0  ;;  %v1925_v11 = vmul.f32 %v1877_v33, %v1681_v42  ;;  %v1494_v51 = vld [vmem:[#allocation8 + $0x48] sm:$0xff]  ;;  %v1540_v33 = vmul.f32 %v1492_v7, %v3741_v27  ;;  %v1734_v0 = vld [vmem:[#allocation9 + $0x30] sm:$0xff]  ;;  %v1883_v7 = vld [vmem:[#allocation11 + $0x58] sm:$0xff] }
 0x243   : > { %v1968_v5 = vadd.f32 %v1920_v63, %v1824_v46  ;;  %v1969_v14 = vadd.f32 %v1921_v60, %v1825_v17  ;;  %v1779_v24 = vmul.f32 %v1731_v55, %v1697_v20  ;;  %v1781_v18 = vmul.f32 %v1733_v1, %v1713_v21  ;;  %v1588_v37 = vpop.permute.xlu1 %1587  ;;  %v1496_v63 = vld [vmem:[#allocation8 + $0x58] sm:$0xff]  ;;  %v1878_v60 = vld [vmem:[#allocation11 + $0x30] sm:$0xff] }
 0x244   : > { %v1924_v15 = vmul.f32 %v1876_v19, %v1697_v20  ;;  %v1923_v41 = vmul.f32 %v1875_v61, %v1713_v21  ;;  %v1970_v46 = vadd.f32 %v1922_v13, %v1826_v8  ;;  %v1539_v55 = vmul.f32 %v1491_v22, %v3735_v25  ;;  %v1880_v25 = vld [vmem:[#allocation11 + $0x40] sm:$0xff]  ;;  %v1882_v22 = vld [vmem:[#allocation11 + $0x50] sm:$0xff] }
 0x245   : > { %v2716_v23 = vpack.c.bf16 %v1969_v14, %v1968_v5  ;;  %v1827_v32 = vadd.f32 %v1779_v24, %v1536_v16  ;;  %v1829_v4 = vadd.f32 %v1781_v18, %v1538_v59  ;;  %v1650_v58 = vpop.permute.xlu0 %1649  ;;  %v1739_v59 = vld [vmem:[#allocation9 + $0x58] sm:$0xff]  ;;  %v1541_v17 = vmul.f32 %v1493_v10, %v3737_v26 }
 0x246   : > { %v1714_v1 = vsel %vm1679_vm0, %v1650_v58, %v3928_v3  ;;  %v1972_v12 = vadd.f32 %v1924_v15, %v1828_v6  ;;  %v1542_v13 = vmul.f32 %v1494_v51, %v3743_v29  ;;  %v1544_v20 = vmul.f32 %v1496_v63, %v3745_v30  ;;  %v1879_v14 = vld [vmem:[#allocation11 + $0x38] sm:$0xff]  ;;  %v1737_v6 = vld [vmem:[#allocation9 + $0x48] sm:$0xff] }
 0x247   : > { %2112 = vst [vmem:[%s3942_s21] sm:$0xff] %v2716_v23  ;;  %v1971_v2 = vadd.f32 %v1923_v41, %v1827_v32  ;;  %v1973_v42 = vadd.f32 %v1925_v11, %v1829_v4  ;;  %v1784_v16 = vmul.f32 %v1736_v28, %v1714_v1  ;;  %v1652_v61 = vpop.permute.xlu1 %1651  ;;  %v1543_v27 = vmul.f32 %v1495_v62, %v3749_v31  ;;  %v1738_v11 = vld [vmem:[#allocation9 + $0x50] sm:$0xff]  ;;  %v1881_v15 = vld [vmem:[#allocation11 + $0x48] sm:$0xff] }
 0x248   : > { %v1715_v19 = vsel %vm1679_vm0, %v1652_v61, %v1588_v37  ;;  %v1926_v30 = vmul.f32 %v1878_v60, %v1714_v1 }
 0x249   : > { %v2717_v21 = vpack.c.bf16 %v1972_v12, %v1971_v2  ;;  %v2770_v5 = vpack.c.bf16 %v1973_v42, %v1970_v46  ;;  %v1618_v24 = vpop.permute.xlu0 %1617  ;;  %v1787_v26 = vmul.f32 %v1739_v59, %v1715_v19  ;;  %v1832_v29 = vadd.f32 %v1784_v16, %v1541_v17 }
 0x24a   : > { %v1682_v18 = vsel %vm1679_vm0, %v1618_v24, %v1650_v58  ;;  %v1698_v8 = vsel %vm1679_vm0, %v3928_v3, %v1618_v24  ;;  %v1929_v62 = vmul.f32 %v1881_v15, %v1715_v19  ;;  %v1499_v19 = vld [vmem:[#allocation8 + $0x70] sm:$0xff]  ;;  %v1740_v15 = vld [vmem:[#allocation9 + $0x60] sm:$0xff] }
 0x24b   : > { %2113 = vst [vmem:[%s3942_s21 + $0x8] sm:$0xff] %v2717_v21  ;;  %2771 = vst [vmem:[%s3961_s12] sm:$0xff] %v2770_v5   ;;  %v1782_v31 = vmul.f32 %v1734_v0, %v1698_v8  ;;  %v1783_v28 = vmul.f32 %v1735_v9, %v1682_v18  ;;  %v1620_v58 = vpop.permute.xlu1 %1619  ;;  %v1927_v10 = vmul.f32 %v1879_v14, %v1698_v8  ;;  %v1742_v9 = vld [vmem:[#allocation9 + $0x70] sm:$0xff]  ;;  %v1497_v21 = vld [vmem:[#allocation8 + $0x60] sm:$0xff] }
 0x24c   : > { %v1928_v23 = vmul.f32 %v1880_v25, %v1682_v18  ;;  %v1683_v3 = vsel %vm1679_vm0, %v1620_v58, %v1652_v61  ;;  %v1699_v32 = vsel %vm1679_vm0, %v1588_v37, %v1620_v58  ;;  %v1835_v1 = vadd.f32 %v1787_v26, %v1544_v20  ;;  %v1498_v37 = vld [vmem:[#allocation8 + $0x68] sm:$0xff]  ;;  %v1500_v20 = vld [vmem:[#allocation8 + $0x78] sm:$0xff] }
 0x24d   : > { %v1830_v4 = vadd.f32 %v1782_v31, %v1539_v55  ;;  %v1831_v41 = vadd.f32 %v1783_v28, %v1540_v33  ;;  %v1785_v51 = vmul.f32 %v1737_v6, %v1699_v32  ;;  %v1786_v63 = vmul.f32 %v1738_v11, %v1683_v3  ;;  %v1590_v46 = vpop.permute.xlu0 %1589  ;;  %v1502_v25 = vld [vmem:[#allocation8 + $0x88] sm:$0xff] }
 0x24e   : > { %v1930_v2 = vmul.f32 %v1882_v22, %v1699_v32  ;;  %v1931_v12 = vmul.f32 %v1883_v7, %v1683_v3  ;;  %v1976_v0 = vadd.f32 %v1928_v23, %v1832_v29  ;;  %v1745_v8 = vld [vmem:[#allocation9 + $0x88] sm:$0xff]  ;;  %v1545_v11 = vmul.f32 %v1497_v21, %v3756_v34  ;;  %v1884_v29 = vld [vmem:[#allocation11 + $0x60] sm:$0xff]  ;;  %v1886_v23 = vld [vmem:[#allocation11 + $0x70] sm:$0xff] }
 0x24f   : > { %v1974_v42 = vadd.f32 %v1926_v30, %v1830_v4  ;;  %v1975_v16 = vadd.f32 %v1927_v10, %v1831_v41  ;;  %v1833_v59 = vadd.f32 %v1785_v51, %v1542_v13  ;;  %v1834_v17 = vadd.f32 %v1786_v63, %v1543_v27  ;;  %v1592_v60 = vpop.permute.xlu1 %1591  ;;  %v1501_v27 = vld [vmem:[#allocation8 + $0x80] sm:$0xff]  ;;  %v1741_v31 = vld [vmem:[#allocation9 + $0x68] sm:$0xff] }
 0x250   : > { %v1979_v61 = vadd.f32 %v1931_v12, %v1835_v1  ;;  %v1546_v28 = vmul.f32 %v1498_v37, %v3762_v36  ;;  %v1548_v22 = vmul.f32 %v1500_v20, %v3764_v38  ;;  %v1547_v7 = vmul.f32 %v1499_v19, %v3758_v35  ;;  %v1885_v10 = vld [vmem:[#allocation11 + $0x68] sm:$0xff]  ;;  %v1743_v36 = vld [vmem:[#allocation9 + $0x78] sm:$0xff]  ;;  %v1744_v51 = vld [vmem:[#allocation9 + $0x80] sm:$0xff] }
 0x251   : > { %v2718_v55 = vpack.c.bf16 %v1975_v16, %v1974_v42  ;;  %v1977_v33 = vadd.f32 %v1929_v62, %v1833_v59  ;;  %v1978_v5 = vadd.f32 %v1930_v2, %v1834_v17  ;;  %v1654_v14 = vpop.permute.xlu0 %1653  ;;  %v1550_v58 = vmul.f32 %v1502_v25, %v3766_v39  ;;  %v1887_v35 = vld [vmem:[#allocation11 + $0x78] sm:$0xff]  ;;  %v1888_v62 = vld [vmem:[#allocation11 + $0x80] sm:$0xff]  ;;  %v1889_v2 = vld [vmem:[#allocation11 + $0x88] sm:$0xff] }
 0x252   : > { %v2775_v24 = vpack.c.bf16 %v1979_v61, %v1976_v0  ;;  %v1716_v13 = vsel %vm1679_vm0, %v1654_v14, %v1590_v46  ;;  %v1549_v34 = vmul.f32 %v1501_v27, %v3770_v40  ;;  %v1748_v27 = vld [vmem:[#allocation9 + $0xa0] sm:$0xff] }
 0x253   : > { %2114 = vst [vmem:[%s3942_s21 + $0x10] sm:$0xff] %v2718_v55  ;;  %v2719_v26 = vpack.c.bf16 %v1978_v5, %v1977_v33  ;;  %v1790_v18 = vmul.f32 %v1742_v9, %v1716_v13  ;;  %v1656_v6 = vpop.permute.xlu1 %1655  ;;  %v1932_v63 = vmul.f32 %v1884_v29, %v1716_v13  ;;  %v1506_v29 = vld [vmem:[#allocation8 + $0xa8] sm:$0xff] }
 0x254   : > { %2847 = vst [vmem:[%s3961_s12 + $0x8] sm:$0xff] %v2775_v24   ;;  %v1717_v30 = vsel %vm1679_vm0, %v1656_v6, %v1592_v60 }
 0x255   : > { %2115 = vst [vmem:[%s3942_s21 + $0x18] sm:$0xff] %v2719_v26  ;;  %v1622_v3 = vpop.permute.xlu0 %1621  ;;  %v1793_v32 = vmul.f32 %v1745_v8, %v1717_v30  ;;  %v1838_v38 = vadd.f32 %v1790_v18, %v1547_v7  ;;  %v1935_v37 = vmul.f32 %v1887_v35, %v1717_v30  ;;  %v1503_v26 = vld [vmem:[#allocation8 + $0x90] sm:$0xff]  ;;  %v1505_v30 = vld [vmem:[#allocation8 + $0xa0] sm:$0xff]  ;;  %v1891_v35 = vld [vmem:[#allocation11 + $0x98] sm:$0xff] }
 0x256   : > { %v1684_v4 = vsel %vm1679_vm0, %v1622_v3, %v1654_v14  ;;  %v1700_v41 = vsel %vm1679_vm0, %v1590_v46, %v1622_v3  ;;  %v1551_v3 = vmul.f32 %v1503_v26, %v3777_v43 }
 0x257   : > { %v1788_v1 = vmul.f32 %v1740_v15, %v1700_v41  ;;  %v1789_v39 = vmul.f32 %v1741_v31, %v1684_v4  ;;  %v1624_v12 = vpop.permute.xlu1 %1623  ;;  %v1933_v42 = vmul.f32 %v1885_v10, %v1700_v41  ;;  %v1934_v16 = vmul.f32 %v1886_v23, %v1684_v4  ;;  %v1508_v15 = vld [vmem:[#allocation8 + $0xb8] sm:$0xff]  ;;  %v1746_v4 = vld [vmem:[#allocation9 + $0x90] sm:$0xff] }
 0x258   : > { %v1685_v40 = vsel %vm1679_vm0, %v1624_v12, %v1656_v6  ;;  %v1701_v59 = vsel %vm1679_vm0, %v1592_v60, %v1624_v12  ;;  %v1841_v21 = vadd.f32 %v1793_v32, %v1550_v58  ;;  %v1504_v60 = vld [vmem:[#allocation8 + $0x98] sm:$0xff] }
 0x259   : > { %v1836_v17 = vadd.f32 %v1788_v1, %v1545_v11  ;;  %v1837_v46 = vadd.f32 %v1789_v39, %v1546_v28  ;;  %v1791_v0 = vmul.f32 %v1743_v36, %v1701_v59  ;;  %v1792_v61 = vmul.f32 %v1744_v51, %v1685_v40  ;;  %v1594_v9 = vpop.permute.xlu0 %1593  ;;  %v1751_v10 = vld [vmem:[#allocation9 + $0xb8] sm:$0xff]  ;;  %v1892_v1 = vld [vmem:[#allocation11 + $0xa0] sm:$0xff] }
 0x25a   : > { %v1936_v55 = vmul.f32 %v1888_v62, %v1701_v59  ;;  %v1937_v33 = vmul.f32 %v1889_v2, %v1685_v40  ;;  %v1982_v24 = vadd.f32 %v1934_v16, %v1838_v38  ;;  %v1747_v41 = vld [vmem:[#allocation9 + $0x98] sm:$0xff]  ;;  %v1552_v36 = vmul.f32 %v1504_v60, %v3783_v45  ;;  %v1749_v45 = vld [vmem:[#allocation9 + $0xa8] sm:$0xff]  ;;  %v1894_v59 = vld [vmem:[#allocation11 + $0xb0] sm:$0xff] }
 0x25b   : > { %v1980_v5 = vadd.f32 %v1932_v63, %v1836_v17  ;;  %v1981_v14 = vadd.f32 %v1933_v42, %v1837_v46  ;;  %v1839_v20 = vadd.f32 %v1791_v0, %v1548_v22  ;;  %v1840_v19 = vadd.f32 %v1792_v61, %v1549_v34  ;;  %v1596_v25 = vpop.permute.xlu1 %1595  ;;  %v1507_v22 = vld [vmem:[#allocation8 + $0xb0] sm:$0xff]  ;;  %v1895_v17 = vld [vmem:[#allocation11 + $0xb8] sm:$0xff] }
 0x25c   : > { %v1985_v13 = vadd.f32 %v1937_v33, %v1841_v21  ;;  %v1890_v34 = vld [vmem:[#allocation11 + $0x90] sm:$0xff]  ;;  %v1554_v51 = vmul.f32 %v1506_v29, %v3785_v47  ;;  %v1553_v38 = vmul.f32 %v1505_v30, %v3779_v44  ;;  %v1556_v63 = vmul.f32 %v1508_v15, %v3787_v48  ;;  %v1893_v44 = vld [vmem:[#allocation11 + $0xa8] sm:$0xff]  ;;  %v1509_v29 = vld [vmem:[#allocation8 + $0xc0] sm:$0xff] }
 0x25d   : > { %v2720_v18 = vpack.c.bf16 %v1981_v14, %v1980_v5  ;;  %v1983_v8 = vadd.f32 %v1935_v37, %v1839_v20  ;;  %v1984_v6 = vadd.f32 %v1936_v55, %v1840_v19  ;;  %v1658_v11 = vpop.permute.xlu0 %1657  ;;  %v1555_v43 = vmul.f32 %v1507_v22, %v3791_v49  ;;  %v1750_v42 = vld [vmem:[#allocation9 + $0xb0] sm:$0xff]  ;;  %v1512_v22 = vld [vmem:[#allocation8 + $0xd8] sm:$0xff] }
 0x25e   : > { %v2780_v31 = vpack.c.bf16 %v1985_v13, %v1982_v24  ;;  %v1718_v28 = vsel %vm1679_vm0, %v1658_v11, %v1594_v9 }
 0x25f   : > { %2116 = vst [vmem:[%s3942_s21 + $0x20] sm:$0xff] %v2720_v18  ;;  %v2721_v7 = vpack.c.bf16 %v1984_v6, %v1983_v8  ;;  %v1796_v58 = vmul.f32 %v1748_v27, %v1718_v28  ;;  %v1660_v23 = vpop.permute.xlu1 %1659  ;;  %v1938_v16 = vmul.f32 %v1890_v34, %v1718_v28 }
 0x260   : > { %2848 = vst [vmem:[%s3961_s12 + $0x10] sm:$0xff] %v2780_v31   ;;  %v1719_v32 = vsel %vm1679_vm0, %v1660_v23, %v1596_v25 }
 0x261   : > { %2117 = vst [vmem:[%s3942_s21 + $0x28] sm:$0xff] %v2721_v7  ;;  %v1626_v39 = vpop.permute.xlu0 %1625  ;;  %v1799_v62 = vmul.f32 %v1751_v10, %v1719_v32  ;;  %v1844_v47 = vadd.f32 %v1796_v58, %v1553_v38  ;;  %v1941_v20 = vmul.f32 %v1893_v44, %v1719_v32  ;;  %v1511_v7 = vld [vmem:[#allocation8 + $0xd0] sm:$0xff]  ;;  %v1514_v58 = vld [vmem:[#allocation8 + $0xe8] sm:$0xff] }
 0x262   : > { %v1686_v2 = vsel %vm1679_vm0, %v1626_v39, %v1658_v11  ;;  %v1702_v12 = vsel %vm1679_vm0, %v1594_v9, %v1626_v39  ;;  %v1754_v11 = vld [vmem:[#allocation9 + $0xd0] sm:$0xff]  ;;  %v1560_v39 = vmul.f32 %v1512_v22, %v3806_v56 }
 0x263   : > { %v1794_v40 = vmul.f32 %v1746_v4, %v1702_v12  ;;  %v1795_v48 = vmul.f32 %v1747_v41, %v1686_v2  ;;  %v1628_v46 = vpop.permute.xlu1 %1627  ;;  %v1939_v0 = vmul.f32 %v1891_v35, %v1702_v12  ;;  %v1940_v61 = vmul.f32 %v1892_v1, %v1686_v2  ;;  %v1757_v4 = vld [vmem:[#allocation9 + $0xe8] sm:$0xff]  ;;  %v1898_v12 = vld [vmem:[#allocation11 + $0xd0] sm:$0xff] }
 0x264   : > { %v1687_v49 = vsel %vm1679_vm0, %v1628_v46, %v1660_v23  ;;  %v1703_v21 = vsel %vm1679_vm0, %v1596_v25, %v1628_v46  ;;  %v1847_v14 = vadd.f32 %v1799_v62, %v1556_v63  ;;  %v1510_v25 = vld [vmem:[#allocation8 + $0xc8] sm:$0xff]  ;;  %v1752_v63 = vld [vmem:[#allocation9 + $0xc0] sm:$0xff]  ;;  %v1562_v62 = vmul.f32 %v1514_v58, %v3808_v57 }
 0x265   : > { %v1842_v37 = vadd.f32 %v1794_v40, %v1551_v3  ;;  %v1843_v9 = vadd.f32 %v1795_v48, %v1552_v36  ;;  %v1797_v55 = vmul.f32 %v1749_v45, %v1703_v21  ;;  %v1798_v33 = vmul.f32 %v1750_v42, %v1687_v49  ;;  %v1598_v5 = vpop.permute.xlu0 %1597  ;;  %v1513_v3 = vld [vmem:[#allocation8 + $0xe0] sm:$0xff]  ;;  %v1753_v35 = vld [vmem:[#allocation9 + $0xc8] sm:$0xff] }
 0x266   : > { %v1942_v19 = vmul.f32 %v1894_v59, %v1703_v21  ;;  %v1943_v24 = vmul.f32 %v1895_v17, %v1687_v49  ;;  %v1988_v8 = vadd.f32 %v1940_v61, %v1844_v47  ;;  %v1557_v36 = vmul.f32 %v1509_v29, %v3798_v52  ;;  %v1897_v2 = vld [vmem:[#allocation11 + $0xc8] sm:$0xff]  ;;  %v4303_v52 = vld [vmem:[#allocation23_spill] sm:$0xff] }
 0x267   : > { %v1986_v13 = vadd.f32 %v1938_v16, %v1842_v37  ;;  %v1987_v27 = vadd.f32 %v1939_v0, %v1843_v9  ;;  %v1845_v26 = vadd.f32 %v1797_v55, %v1554_v51  ;;  %v1846_v60 = vadd.f32 %v1798_v33, %v1555_v43  ;;  %v1600_v18 = vpop.permute.xlu1 %1599  ;;  %v1896_v51 = vld [vmem:[#allocation11 + $0xc0] sm:$0xff]  ;;  %v1901_v46 = vld [vmem:[#allocation11 + $0xe8] sm:$0xff] }
 0x268   : > { %v1991_v6 = vadd.f32 %v1943_v24, %v1847_v14  ;;  %v1558_v1 = vmul.f32 %v1510_v25, %v3804_v54  ;;  %v1559_v43 = vmul.f32 %v1511_v7, %v3800_v53  ;;  %v1561_v42 = vmul.f32 %v1513_v3, %v4303_v52  ;;  %v1755_v54 = vld [vmem:[#allocation9 + $0xd8] sm:$0xff]  ;;  %v1756_v40 = vld [vmem:[#allocation9 + $0xe0] sm:$0xff]  ;;  %v1518_v7 = vld [vmem:[#allocation8 + $0x108] sm:$0xff] }
 0x269   : > { %v2722_v30 = vpack.c.bf16 %v1987_v27, %v1986_v13  ;;  %v1989_v15 = vadd.f32 %v1941_v20, %v1845_v26  ;;  %v1990_v31 = vadd.f32 %v1942_v19, %v1846_v60  ;;  %v1662_v28 = vpop.permute.xlu0 %1661  ;;  %v1899_v53 = vld [vmem:[#allocation11 + $0xd8] sm:$0xff]  ;;  %v1900_v17 = vld [vmem:[#allocation11 + $0xe0] sm:$0xff] }
 0x26a   : > { %v2785_v10 = vpack.c.bf16 %v1991_v6, %v1988_v8  ;;  %v1720_v23 = vsel %vm1679_vm0, %v1662_v28, %v1598_v5  ;;  %v1760_v25 = vld [vmem:[#allocation9 + $0x100] sm:$0xff] }
 0x26b   : > { %2118 = vst [vmem:[%s3942_s21 + $0x30] sm:$0xff] %v2722_v30  ;;  %v2723_v34 = vpack.c.bf16 %v1990_v31, %v1989_v15  ;;  %v1802_v32 = vmul.f32 %v1754_v11, %v1720_v23  ;;  %v1664_v41 = vpop.permute.xlu1 %1663  ;;  %v1944_v48 = vmul.f32 %v1896_v51, %v1720_v23  ;;  %v1515_v30 = vld [vmem:[#allocation8 + $0xf0] sm:$0xff]  ;;  %v1517_v58 = vld [vmem:[#allocation8 + $0x100] sm:$0xff]  ;;  %v4304_v51 = vld [vmem:[#allocation24_spill] sm:$0xff] }
 0x26c   : > { %2849 = vst [vmem:[%s3961_s12 + $0x18] sm:$0xff] %v2785_v10   ;;  %v1721_v38 = vsel %vm1679_vm0, %v1664_v41, %v1600_v18  ;;  %v1520_v10 = vld [vmem:[#allocation8 + $0x118] sm:$0xff] }
 0x26d   : > { %2119 = vst [vmem:[%s3942_s21 + $0x38] sm:$0xff] %v2723_v34  ;;  %v1630_v45 = vpop.permute.xlu0 %1629  ;;  %v1805_v47 = vmul.f32 %v1757_v4, %v1721_v38  ;;  %v1850_v56 = vadd.f32 %v1802_v32, %v1559_v43  ;;  %v1947_v19 = vmul.f32 %v1899_v53, %v1721_v38  ;;  %v1519_v34 = vld [vmem:[#allocation8 + $0x110] sm:$0xff]  ;;  %v1563_v38 = vmul.f32 %v1515_v30, %v4304_v51  ;;  %v4305_v43 = vld [vmem:[#allocation26_spill] sm:$0xff] }
 0x26e   : > { %v1688_v16 = vsel %vm1679_vm0, %v1630_v45, %v1662_v28  ;;  %v1704_v44 = vsel %vm1679_vm0, %v1598_v5, %v1630_v45  ;;  %v4307_v45 = vld [vmem:[#allocation25_spill] sm:$0xff] }
 0x26f   : > { %v1800_v59 = vmul.f32 %v1752_v63, %v1704_v44  ;;  %v1801_v57 = vmul.f32 %v1753_v35, %v1688_v16  ;;  %v1632_v0 = vpop.permute.xlu1 %1631  ;;  %v1945_v61 = vmul.f32 %v1897_v2, %v1704_v44  ;;  %v1946_v49 = vmul.f32 %v1898_v12, %v1688_v16  ;;  %v1902_v63 = vld [vmem:[#allocation11 + $0xf0] sm:$0xff]  ;;  %v4306_v2 = vld [vmem:[#allocation27_spill] sm:$0xff]  ;;  %v1903_v16 = vld [vmem:[#allocation11 + $0xf8] sm:$0xff] }
 0x270   : > { %v1689_v21 = vsel %vm1679_vm0, %v1632_v0, %v1664_v41  ;;  %v1705_v37 = vsel %vm1679_vm0, %v1600_v18, %v1632_v0  ;;  %v1853_v20 = vadd.f32 %v1805_v47, %v1562_v62  ;;  %v1516_v18 = vld [vmem:[#allocation8 + $0xf8] sm:$0xff]  ;;  %v1566_v12 = vmul.f32 %v1518_v7, %v4306_v2  ;;  %v1904_v44 = vld [vmem:[#allocation11 + $0x100] sm:$0xff]  ;;  %v1766_v7 = vld [vmem:[#allocation9 + $0x130] sm:$0xff] }
 0x271   : > { %v1848_v9 = vadd.f32 %v1800_v59, %v1557_v36  ;;  %v1849_v55 = vadd.f32 %v1801_v57, %v1558_v1  ;;  %v1803_v33 = vmul.f32 %v1755_v54, %v1705_v37  ;;  %v1804_v5 = vmul.f32 %v1756_v40, %v1689_v21  ;;  %v1602_v14 = vpop.permute.xlu0 %1601  ;;  %v1763_v41 = vld [vmem:[#allocation9 + $0x118] sm:$0xff]  ;;  %v1758_v1 = vld [vmem:[#allocation9 + $0xf0] sm:$0xff]  ;;  %v1761_v57 = vld [vmem:[#allocation9 + $0x108] sm:$0xff] }
 0x272   : > { %v1948_v24 = vmul.f32 %v1900_v17, %v1705_v37  ;;  %v1949_v13 = vmul.f32 %v1901_v46, %v1689_v21  ;;  %v1994_v11 = vadd.f32 %v1946_v49, %v1850_v56  ;;  %v1564_v62 = vmul.f32 %v1516_v18, %v4305_v43  ;;  %v4309_v40 = vld [vmem:[#allocation29_spill] sm:$0xff]  ;;  %v4310_v43 = vld [vmem:[#allocation30_spill] sm:$0xff]  ;;  %v1908_v2 = vld [vmem:[#allocation11 + $0x120] sm:$0xff] }
 0x273   : > { %v1992_v27 = vadd.f32 %v1944_v48, %v1848_v9  ;;  %v1993_v26 = vadd.f32 %v1945_v61, %v1849_v55  ;;  %v1851_v60 = vadd.f32 %v1803_v33, %v1560_v39  ;;  %v1852_v8 = vadd.f32 %v1804_v5, %v1561_v42  ;;  %v1604_v6 = vpop.permute.xlu1 %1603  ;;  %v1759_v39 = vld [vmem:[#allocation9 + $0xf8] sm:$0xff]  ;;  %v4308_v42 = vld [vmem:[#allocation28_spill] sm:$0xff]  ;;  %v1762_v17 = vld [vmem:[#allocation9 + $0x110] sm:$0xff] }
 0x274   : > { %v1997_v29 = vadd.f32 %v1949_v13, %v1853_v20  ;;  %v1565_v52 = vmul.f32 %v1517_v58, %v4307_v45  ;;  %v1568_v47 = vmul.f32 %v1520_v10, %v4308_v42  ;;  %v1567_v56 = vmul.f32 %v1519_v34, %v4309_v40  ;;  %v1905_v61 = vld [vmem:[#allocation11 + $0x108] sm:$0xff]  ;;  %v1906_v37 = vld [vmem:[#allocation11 + $0x110] sm:$0xff]  ;;  %v1907_v9 = vld [vmem:[#allocation11 + $0x118] sm:$0xff] }
 0x275   : > { %v2724_v15 = vpack.c.bf16 %v1993_v26, %v1992_v27  ;;  %v1995_v31 = vadd.f32 %v1947_v19, %v1851_v60  ;;  %v1996_v28 = vadd.f32 %v1948_v24, %v1852_v8  ;;  %v1666_v22 = vpop.permute.xlu0 %1665  ;;  %v1521_v58 = vld [vmem:[#allocation8 + $0x120] sm:$0xff]  ;;  %v4311_v42 = vld [vmem:[#allocation32_spill] sm:$0xff] }
 0x276   : > { %v2790_v23 = vpack.c.bf16 %v1997_v29, %v1994_v11  ;;  %v1722_v3 = vsel %vm1679_vm0, %v1666_v22, %v1602_v14  ;;  %v1764_v45 = vld [vmem:[#allocation9 + $0x120] sm:$0xff] }
 0x277   : > { %2120 = vst [vmem:[%s3942_s21 + $0x40] sm:$0xff] %v2724_v15  ;;  %v2725_v32 = vpack.c.bf16 %v1996_v28, %v1995_v31  ;;  %v1808_v4 = vmul.f32 %v1760_v25, %v1722_v3  ;;  %v1668_v36 = vpop.permute.xlu1 %1667  ;;  %v1950_v0 = vmul.f32 %v1902_v63, %v1722_v3 }
 0x278   : > { %2850 = vst [vmem:[%s3961_s12 + $0x20] sm:$0xff] %v2790_v23   ;;  %v1723_v35 = vsel %vm1679_vm0, %v1668_v36, %v1604_v6 }
 0x279   : > { %2121 = vst [vmem:[%s3942_s21 + $0x48] sm:$0xff] %v2725_v32  ;;  %v1634_v54 = vpop.permute.xlu0 %1633  ;;  %v1811_v48 = vmul.f32 %v1763_v41, %v1723_v35  ;;  %v1856_v46 = vadd.f32 %v1808_v4, %v1565_v52  ;;  %v1953_v8 = vmul.f32 %v1905_v61, %v1723_v35  ;;  %v1524_v32 = vld [vmem:[#allocation8 + $0x138] sm:$0xff]  ;;  %v1523_v4 = vld [vmem:[#allocation8 + $0x130] sm:$0xff]  ;;  %v1526_v41 = vld [vmem:[#allocation8 + $0x148] sm:$0xff] }
 0x27a   : > { %v1690_v53 = vsel %vm1679_vm0, %v1634_v54, %v1666_v22  ;;  %v1706_v59 = vsel %vm1679_vm0, %v1602_v14, %v1634_v54  ;;  %v1765_v52 = vld [vmem:[#allocation9 + $0x128] sm:$0xff]  ;;  %v4313_v54 = vld [vmem:[#allocation31_spill] sm:$0xff] }
 0x27b   : > { %v1806_v49 = vmul.f32 %v1758_v1, %v1706_v59  ;;  %v1807_v21 = vmul.f32 %v1759_v39, %v1690_v53  ;;  %v1636_v55 = vpop.permute.xlu1 %1635  ;;  %v1951_v33 = vmul.f32 %v1903_v16, %v1706_v59  ;;  %v1952_v5 = vmul.f32 %v1904_v44, %v1690_v53  ;;  %v1769_v1 = vld [vmem:[#allocation9 + $0x148] sm:$0xff]  ;;  %v4312_v16 = vld [vmem:[#allocation33_spill] sm:$0xff] }
 0x27c   : > { %v1691_v20 = vsel %vm1679_vm0, %v1636_v55, %v1668_v36  ;;  %v1707_v19 = vsel %vm1679_vm0, %v1604_v6, %v1636_v55  ;;  %v1859_v60 = vadd.f32 %v1811_v48, %v1568_v47  ;;  %v1522_v6 = vld [vmem:[#allocation8 + $0x128] sm:$0xff]  ;;  %v1572_v44 = vmul.f32 %v1524_v32, %v4312_v16  ;;  %v1910_v59 = vld [vmem:[#allocation11 + $0x130] sm:$0xff]  ;;  %v1772_v32 = vld [vmem:[#allocation9 + $0x160] sm:$0xff] }
 0x27d   : > { %v1854_v24 = vadd.f32 %v1806_v49, %v1563_v38  ;;  %v1855_v14 = vadd.f32 %v1807_v21, %v1564_v62  ;;  %v1809_v13 = vmul.f32 %v1761_v57, %v1707_v19  ;;  %v1810_v27 = vmul.f32 %v1762_v17, %v1691_v20  ;;  %v1606_v26 = vpop.permute.xlu0 %1605  ;;  %v1525_v38 = vld [vmem:[#allocation8 + $0x140] sm:$0xff]  ;;  %v1909_v53 = vld [vmem:[#allocation11 + $0x128] sm:$0xff]  ;;  %v1767_v21 = vld [vmem:[#allocation9 + $0x138] sm:$0xff] }
 0x27e   : > { %v1954_v11 = vmul.f32 %v1906_v37, %v1707_v19  ;;  %v1955_v29 = vmul.f32 %v1907_v9, %v1691_v20  ;;  %v2000_v28 = vadd.f32 %v1952_v5, %v1856_v46  ;;  %v1569_v62 = vmul.f32 %v1521_v58, %v4310_v43  ;;  %v4315_v17 = vld [vmem:[#allocation35_spill] sm:$0xff]  ;;  %v1914_v16 = vld [vmem:[#allocation11 + $0x150] sm:$0xff] }
 0x27f   : > { %v1998_v25 = vadd.f32 %v1950_v0, %v1854_v24  ;;  %v1999_v30 = vadd.f32 %v1951_v33, %v1855_v14  ;;  %v1857_v18 = vadd.f32 %v1809_v13, %v1566_v12  ;;  %v1858_v15 = vadd.f32 %v1810_v27, %v1567_v56  ;;  %v1608_v31 = vpop.permute.xlu1 %1607  ;;  %v4314_v56 = vld [vmem:[#allocation34_spill] sm:$0xff]  ;;  %v1768_v37 = vld [vmem:[#allocation9 + $0x140] sm:$0xff]  ;;  %v1913_v24 = vld [vmem:[#allocation11 + $0x148] sm:$0xff] }
 0x280   : > { %v2003_v22 = vadd.f32 %v1955_v29, %v1859_v60  ;;  %v1570_v47 = vmul.f32 %v1522_v6, %v4311_v42  ;;  %v1571_v40 = vmul.f32 %v1523_v4, %v4313_v54  ;;  %v1574_v48 = vmul.f32 %v1526_v41, %v4314_v56  ;;  %v1911_v33 = vld [vmem:[#allocation11 + $0x138] sm:$0xff]  ;;  %v1912_v19 = vld [vmem:[#allocation11 + $0x140] sm:$0xff]  ;;  %v1527_v4 = vld [vmem:[#allocation8 + $0x150] sm:$0xff] }
 0x281   : > { %v2726_v10 = vpack.c.bf16 %v1999_v30, %v1998_v25  ;;  %v2001_v23 = vadd.f32 %v1953_v8, %v1857_v18  ;;  %v2002_v3 = vadd.f32 %v1954_v11, %v1858_v15  ;;  %v1670_v34 = vpop.permute.xlu0 %1669  ;;  %v1573_v46 = vmul.f32 %v1525_v38, %v4315_v17  ;;  %v4316_v42 = vld [vmem:[#allocation36_spill] sm:$0xff]  ;;  %v1770_v54 = vld [vmem:[#allocation9 + $0x150] sm:$0xff]  ;;  %v4317_v56 = vld [vmem:[#allocation38_spill] sm:$0xff] }
 0x282   : > { %v2795_v36 = vpack.c.bf16 %v2003_v22, %v2000_v28  ;;  %v1724_v51 = vsel %vm1679_vm0, %v1670_v34, %v1606_v26 }
 0x283   : > { %2122 = vst [vmem:[%s3942_s21 + $0x50] sm:$0xff] %v2726_v10  ;;  %v2727_v63 = vpack.c.bf16 %v2002_v3, %v2001_v23  ;;  %v1814_v35 = vmul.f32 %v1766_v7, %v1724_v51  ;;  %v1672_v39 = vpop.permute.xlu1 %1671  ;;  %v1956_v55 = vmul.f32 %v1908_v2, %v1724_v51 }
 0x284   : > { %2851 = vst [vmem:[%s3961_s12 + $0x28] sm:$0xff] %v2795_v36   ;;  %v1725_v12 = vsel %vm1679_vm0, %v1672_v39, %v1608_v31 }
 0x285   : > { %2123 = vst [vmem:[%s3942_s21 + $0x58] sm:$0xff] %v2727_v63  ;;  %v1638_v57 = vpop.permute.xlu0 %1637  ;;  %v1817_v0 = vmul.f32 %v1769_v1, %v1725_v12  ;;  %v1862_v9 = vadd.f32 %v1814_v35, %v1571_v40  ;;  %v1959_v15 = vmul.f32 %v1911_v33, %v1725_v12  ;;  %v1530_v63 = vld [vmem:[#allocation8 + $0x168] sm:$0xff]  ;;  %v1529_v35 = vld [vmem:[#allocation8 + $0x160] sm:$0xff]  ;;  %v1532_v1 = vld [vmem:[#allocation8 + $0x178] sm:$0xff] }
 0x286   : > { %v1692_v61 = vsel %vm1679_vm0, %v1638_v57, %v1670_v34  ;;  %v1708_v49 = vsel %vm1679_vm0, %v1606_v26, %v1638_v57  ;;  %v1771_v40 = vld [vmem:[#allocation9 + $0x158] sm:$0xff]  ;;  %v4319_v57 = vld [vmem:[#allocation37_spill] sm:$0xff] }
 0x287   : > { %v1812_v5 = vmul.f32 %v1764_v45, %v1708_v49  ;;  %v1813_v20 = vmul.f32 %v1765_v52, %v1692_v61  ;;  %v1640_v14 = vpop.permute.xlu1 %1639  ;;  %v1957_v13 = vmul.f32 %v1909_v53, %v1708_v49  ;;  %v1958_v27 = vmul.f32 %v1910_v59, %v1692_v61  ;;  %v1775_v45 = vld [vmem:[#allocation9 + $0x178] sm:$0xff]  ;;  %v4318_v53 = vld [vmem:[#allocation39_spill] sm:$0xff] }
 0x288   : > { %v1693_v60 = vsel %vm1679_vm0, %v1640_v14, %v1672_v39  ;;  %v1709_v8 = vsel %vm1679_vm0, %v1608_v31, %v1640_v14  ;;  %v1865_v18 = vadd.f32 %v1817_v0, %v1574_v48  ;;  %v1528_v31 = vld [vmem:[#allocation8 + $0x158] sm:$0xff]  ;;  %v1578_v59 = vmul.f32 %v1530_v63, %v4318_v53  ;;  %v1916_v49 = vld [vmem:[#allocation11 + $0x160] sm:$0xff] }
 0x289   : > { %v1860_v11 = vadd.f32 %v1812_v5, %v1569_v62  ;;  %v1861_v26 = vadd.f32 %v1813_v20, %v1570_v47  ;;  %v1815_v29 = vmul.f32 %v1767_v21, %v1709_v8  ;;  %v1816_v25 = vmul.f32 %v1768_v37, %v1693_v60  ;;  %v1610_v30 = vpop.permute.xlu0 %1609  ;;  %v1531_v62 = vld [vmem:[#allocation8 + $0x170] sm:$0xff]  ;;  %v1915_v61 = vld [vmem:[#allocation11 + $0x158] sm:$0xff]  ;;  %v1773_v20 = vld [vmem:[#allocation9 + $0x168] sm:$0xff] }
 0x28a   : > { %v1960_v28 = vmul.f32 %v1912_v19, %v1709_v8  ;;  %v1961_v22 = vmul.f32 %v1913_v24, %v1693_v60  ;;  %v2006_v3 = vadd.f32 %v1958_v27, %v1862_v9  ;;  %v1575_v47 = vmul.f32 %v1527_v4, %v4316_v42  ;;  %v4321_v37 = vld [vmem:[#allocation41_spill] sm:$0xff] }
 0x28b   : > { %v2004_v7 = vadd.f32 %v1956_v55, %v1860_v11  ;;  %v2005_v58 = vadd.f32 %v1957_v13, %v1861_v26  ;;  %v1863_v6 = vadd.f32 %v1815_v29, %v1572_v44  ;;  %v1864_v10 = vadd.f32 %v1816_v25, %v1573_v46  ;;  %v1612_v23 = vpop.permute.xlu1 %1611  ;;  %v4320_v46 = vld [vmem:[#allocation40_spill] sm:$0xff]  ;;  %v1774_v19 = vld [vmem:[#allocation9 + $0x170] sm:$0xff]  ;;  %v1919_v11 = vld [vmem:[#allocation11 + $0x178] sm:$0xff] }
 0x28c   : > { %v2009_v34 = vadd.f32 %v1961_v22, %v1865_v18  ;;  %v1576_v48 = vmul.f32 %v1528_v31, %v4317_v56  ;;  %v1577_v17 = vmul.f32 %v1529_v35, %v4319_v57  ;;  %v1580_v0 = vmul.f32 %v1532_v1, %v4320_v46  ;;  %v1917_v13 = vld [vmem:[#allocation11 + $0x168] sm:$0xff]  ;;  %v1918_v8 = vld [vmem:[#allocation11 + $0x170] sm:$0xff] }
 0x28d   : > { %v2728_v41 = vpack.c.bf16 %v2005_v58, %v2004_v7  ;;  %v2007_v36 = vadd.f32 %v1959_v15, %v1863_v6  ;;  %v2008_v51 = vadd.f32 %v1960_v28, %v1864_v10  ;;  %v1674_v38 = vpop.permute.xlu0 %1673  ;;  %v1579_v9 = vmul.f32 %v1531_v62, %v4321_v37 }
 0x28e   : > { %v2800_v39 = vpack.c.bf16 %v2009_v34, %v2006_v3  ;;  %v1726_v43 = vsel %vm1679_vm0, %v1674_v38, %v1610_v30 }
 0x28f   : > { %2124 = vst [vmem:[%s3942_s21 + $0x60] sm:$0xff] %v2728_v41  ;;  %v2729_v2 = vpack.c.bf16 %v2008_v51, %v2007_v36  ;;  %v1820_v12 = vmul.f32 %v1772_v32, %v1726_v43  ;;  %v1676_v52 = vpop.permute.xlu1 %1675  ;;  %v1962_v14 = vmul.f32 %v1914_v16, %v1726_v43 }
 0x290   : > { %2852 = vst [vmem:[%s3961_s12 + $0x30] sm:$0xff] %v2800_v39   ;;  %v1727_v44 = vsel %vm1679_vm0, %v1676_v52, %v1612_v23 }
 0x291   : > { %2125 = vst [vmem:[%s3942_s21 + $0x68] sm:$0xff] %v2729_v2  ;;  %v1642_v21 = vpop.permute.xlu0 %1641  ;;  %v1823_v55 = vmul.f32 %v1775_v45, %v1727_v44  ;;  %v1868_v24 = vadd.f32 %v1820_v12, %v1577_v17  ;;  %v1965_v6 = vmul.f32 %v1917_v13, %v1727_v44 }
 0x292   : > { %v1694_v33 = vsel %vm1679_vm0, %v1642_v21, %v1674_v38  ;;  %v1710_v5 = vsel %vm1679_vm0, %v1610_v30, %v1642_v21 }
 0x293   : > { %v1818_v27 = vmul.f32 %v1770_v54, %v1710_v5  ;;  %v1819_v60 = vmul.f32 %v1771_v40, %v1694_v33  ;;  %v1644_v26 = vpop.permute.xlu1 %1643  ;;  %v1963_v29 = vmul.f32 %v1915_v61, %v1710_v5  ;;  %v1964_v25 = vmul.f32 %v1916_v49, %v1694_v33 }
 0x294   : > { %v1695_v18 = vsel %vm1679_vm0, %v1644_v26, %v1676_v52  ;;  %v1711_v30 = vsel %vm1679_vm0, %v1612_v23, %v1644_v26  ;;  %v1871_v58 = vadd.f32 %v1823_v55, %v1580_v0 }
 0x295   : > { %v1866_v15 = vadd.f32 %v1818_v27, %v1575_v47  ;;  %v1867_v28 = vadd.f32 %v1819_v60, %v1576_v48  ;;  %v1821_v22 = vmul.f32 %v1773_v20, %v1711_v30  ;;  %v1822_v7 = vmul.f32 %v1774_v19, %v1695_v18 }
 0x296   : > { %v1966_v10 = vmul.f32 %v1918_v8, %v1711_v30  ;;  %v1967_v3 = vmul.f32 %v1919_v11, %v1695_v18  ;;  %v2012_v4 = vadd.f32 %v1964_v25, %v1868_v24 }
 0x297   : > { %v2010_v34 = vadd.f32 %v1962_v14, %v1866_v15  ;;  %v2011_v32 = vadd.f32 %v1963_v29, %v1867_v28  ;;  %v1869_v50 = vadd.f32 %v1821_v22, %v1578_v59  ;;  %v1870_v23 = vadd.f32 %v1822_v7, %v1579_v9 }
 0x298   : > { %v2015_v31 = vadd.f32 %v1967_v3, %v1871_v58 }
 0x299   : > { %v2730_v41 = vpack.c.bf16 %v2011_v32, %v2010_v34  ;;  %v2013_v36 = vadd.f32 %v1965_v6, %v1869_v50  ;;  %v2014_v51 = vadd.f32 %v1966_v10, %v1870_v23 }
 0x29a   : > { %v2805_v38 = vpack.c.bf16 %v2015_v31, %v2012_v4 }
 0x29b   : > { %2126 = vst [vmem:[%s3942_s21 + $0x70] sm:$0xff] %v2730_v41  ;;  %v2731_v63 = vpack.c.bf16 %v2014_v51, %v2013_v36 }
 0x29c   : > { %2853 = vst [vmem:[%s3961_s12 + $0x38] sm:$0xff] %v2805_v38  }
 0x29d   : > { %2127 = vst [vmem:[%s3942_s21 + $0x78] sm:$0xff] %v2731_v63 }
 0x29e   : > { %3259 = shalt.err (!%p3256_p1)
}
 0x29f   : > { %s3260_s21 = scalar_lea.hbm %s4105_s5, 1024  ;;  %s3264_s17 = scalar_lea.hbm %s4231_s6, 2048 }
 0x2a0   : > { %p3261_p3 = scmp.ne.s32.totalorder %s4105_s5, %s3260_s21  ;;  %p3265_p2 = scmp.lt.u32.totalorder %s4105_s5, %s4231_s6 }
 0x2a1   : > { %p3266_p4 = scmp.lt.u32.totalorder %s3264_s17, %s3260_s21  ;;  %p3268_p8 = scmp.lt.u32.totalorder %s3260_s21, %s4105_s5 }
 0x2a2   : > { %p3262_p7 = pnand %p3261_p3, %p3618_p10 }
 0x2a3   : > { %p3267_p6 = por %p3266_p4, %p3265_p2 }
 0x2a4   : > { %p3263_p11 = pneg %p3262_p7 }
 0x2a5   : > { %p3269_p12 = por %p3268_p8, %p3267_p6 }
 0x2a7   : > { %p3270_p0 = pnand %p3269_p12, %p3263_p11 }
 0x2a9   : > { %3273 = shalt.err (!%p3270_p0)
}
 0x2aa   : > { %s3411_s1 = smov 4   ;;  %s4324_s19 = smov 64  }
 0x2ab   : > { %2880 = dma.vmem_to_hbm [thread:$0]  (%p3618_p10), %s4097_s23, 1024, %s4105_s5, %s4124_s0, %s4324_s19, %s4324_s19, %s3411_s1  }
 0x2ac   : > { %s2289_s24 = scalar_lea.sflag [#allocation5], %s3673_s14  ;;  %s3274_s8 = scalar_lea.vmem %s4112_s15, 2048 }
 0x2ad   : > { %p3275_p5 = scmp.ne.s32.totalorder %s4112_s15, %s3274_s8  ;;  %s3412_s21 = smov [#allocation12]  }
 0x2ae   : > { %s3278_s12 = sshll.u32 %s3412_s21, 4  ;;  %s3279_s12 = int_to_ptr.vmem [resolvable:$false] %s3278_s12 }
 0x2af   : > { %p3276_p9 = pnand %p3275_p5, %p3618_p10  ;;  %s3280_s10 = scalar_lea.vmem %s3279_s12, 4096 }
 0x2b0   : > { %p3281_p1 = scmp.lt.s32.totalorder %s4112_s15, %s3279_s12  ;;  %p3282_p3 = scmp.lt.s32.totalorder %s3280_s10, %s3274_s8 }
 0x2b1   : > { %p3277_p13 = pneg %p3276_p9 }
 0x2b2   : > { %p3283_p7 = por %p3282_p3, %p3281_p1 }
 0x2b4   : > { %p3284_p11 = pnand %p3283_p7, %p3277_p13 }
 0x2b6   : > { %3287 = shalt.err (!%p3284_p11)
}
 0x2b7   : > { %s3288_s23 = scalar_lea.hbm %s4110_s27, 2048  ;;  %s3292_s20 = scalar_lea.hbm %s4322_s9, 4096 }
 0x2b8   : > { %p3289_p2 = scmp.ne.s32.totalorder %s4110_s27, %s3288_s23  ;;  %p3293_p8 = scmp.lt.u32.totalorder %s4110_s27, %s4322_s9 }
 0x2b9   : > { %p3294_p12 = scmp.lt.u32.totalorder %s3292_s20, %s3288_s23  ;;  %p3296_p5 = scmp.lt.u32.totalorder %s3288_s23, %s4110_s27 }
 0x2ba   : > { %p3290_p4 = pnand %p3289_p2, %p3618_p10 }
 0x2bb   : > { %p3295_p0 = por %p3294_p12, %p3293_p8 }
 0x2bc   : > { %p3291_p6 = pneg %p3290_p4 }
 0x2bd   : > { %p3297_p9 = por %p3296_p5, %p3295_p0 }
 0x2bf   : > { %p3298_p13 = pnand %p3297_p9, %p3291_p6 }
 0x2c1   : > { %3301 = shalt.err (!%p3298_p13)
}
 0x2c2   : > { %s3413_s8 = smov 128   ;;  %s3414_s12 = smov 8  }
 0x2c3   : > { %2879 = dma.vmem_to_hbm [thread:$0]  (%p3618_p10), %s4112_s15, 2048, %s4110_s27, %s2289_s24, %s3413_s8, %s3413_s8, %s3414_s12  }
 0x2c4   : > { %s3302_s10 = scalar_lea.vmem %s4115_s18, 1024  ;;  %s3415_s23 = smov [#allocation15]  }
 0x2c5   : > { %p3303_p1 = scmp.ne.s32.totalorder %s4115_s18, %s3302_s10  ;;  %s3306_s5 = sshll.u32 %s3415_s23, 4  ;;  %s3307_s5 = int_to_ptr.vmem [resolvable:$false] %s3306_s5 }
 0x2c6   : > { %s3308_s17 = scalar_lea.vmem %s3307_s5, 2048  ;;  %p3309_p11 = scmp.lt.s32.totalorder %s4115_s18, %s3307_s5 }
 0x2c7   : > { %p3304_p3 = pnand %p3303_p1, %p3618_p10  ;;  %p3310_p2 = scmp.lt.s32.totalorder %s3308_s17, %s3302_s10 }
 0x2c9   : > { %p3305_p7 = pneg %p3304_p3  ;;  %p3311_p4 = por %p3310_p2, %p3309_p11 }
 0x2cb   : > { %p3312_p6 = pnand %p3311_p4, %p3305_p7 }
 0x2cd   : > { %3315 = shalt.err (!%p3312_p6)
}
 0x2ce   : > { %s3316_s14 = scalar_lea.hbm %s4121_s11, 1024  ;;  %s3320_s24 = scalar_lea.hbm %s4323_s16, 2048 }
 0x2cf   : > { %p3317_p8 = scmp.ne.s32.totalorder %s4121_s11, %s3316_s14  ;;  %p3321_p5 = scmp.lt.u32.totalorder %s4121_s11, %s4323_s16 }
 0x2d0   : > { %p3322_p9 = scmp.lt.u32.totalorder %s3320_s24, %s3316_s14  ;;  %p3324_p1 = scmp.lt.u32.totalorder %s3316_s14, %s4121_s11 }
 0x2d1   : > { %p3318_p12 = pnand %p3317_p8, %p3618_p10 }
 0x2d2   : > { %p3323_p13 = por %p3322_p9, %p3321_p5 }
 0x2d3   : > { %p3319_p0 = pneg %p3318_p12 }
 0x2d4   : > { %p3325_p3 = por %p3324_p1, %p3323_p13 }
 0x2d6   : > { %p3326_p7 = pnand %p3325_p3, %p3319_p0 }
 0x2d8   : > { %3329 = shalt.err (!%p3326_p7)
}
 0x2d9   : > { %2881 = dma.vmem_to_hbm [thread:$0]  (%p3618_p10), %s4115_s18, 1024, %s4121_s11, %s4124_s0, %s4324_s19, %s4324_s19, %s3411_s1  }
 0x2da PF: > { %s4325_s21 = sld [smem:[#allocation21_spill]]  ;;  %s4326_s8 = sld [smem:[#allocation22_spill]] }
 0x2db   : > { %p4328_p2 = scmp.ge.s32.totalorder %s3396_s29, 2 }
 0x2e0   : > { %s2366_s12 = sand.u32 1, %s4325_s21   ;;  %p4327_p11 = scmp.ne.s32.totalorder %s4326_s8, 0 }
 0x2e1   : > { %s2367_s10 = scalar_lea.sflag [#allocation5], %s2366_s12 }
 0x2e2   : > { %p2903_p4 = pnand %p4328_p2, %p4327_p11 }
 0x2e4   : > { %3367 = dma.done.wait (!%p2903_p4), %s2367_s10, 2048  }
 0x2e5   : > { %3369 = vsyncadd (!%p2903_p4), %s2367_s10, 4294965248  ;;  %s4329_s13 = sadd.s32 4294967294, %s3396_s29  }
 0x2e6   : > { %s2375_s23 = sand.u32 1, %s4329_s13  }
 0x2e7   : > { %s2376_s5 = scalar_lea.sflag [#allocation14], %s2375_s23 }
 0x2e8   : > { %3371 = dma.done.wait (!%p2903_p4), %s2376_s5, 2048  }
 0x2e9   : > { %3373 = vsyncadd (!%p2903_p4), %s2376_s5, 4294965248  ;;  %s29_s29 = sadd.s32 1, %s3396_s29   ;;  %s4330_s24 = smov %s3380_s25 }
 0x2ea   : > { %p26_p10 = scmp.ge.s32.totalorder %s29_s29, 4   ;;  %s4331_s25 = smov %s3384_s26 }
 0x2eb   : > { %s4332_s26 = smov %s3627_s7  ;;  %s4333_s27 = smov %s3392_s28 }
 0x2ec   : > { %s4334_s28 = smov %s4336_s22  ;;  %28 = sbr.rel (!%p26_p10) target bundleno = 15 (0xf), region = 145 }
 0x2f3   :  { %2390 = vsyncpa [#allocation4], 1 }
 0x2f4   :  { %2392 = vsyncpa [#allocation4 + $0x1], 1 }
 0x2f5   :  { %2393 = vsyncpa [#allocation7], 1 }
 0x2f6   :  { %2394 = vsyncpa [#allocation10], 1 }
 0x2f7   :  { %2395 = vsyncpa [#allocation5], 1 }
 0x2f8   :  { %2397 = vsyncpa [#allocation5 + $0x1], 1 }
 0x2f9   :  { %2398 = vsyncpa [#allocation14], 1 }
 0x2fa   :  { %2400 = vsyncpa [#allocation14 + $0x1], 1 }

</bundles_post_ra>
